<compile_context>
chip_gen: v6e
topology: v6e:2x2x1
jax: 0.10.0
libtpu: 0.0.40
codegen_flags: <defaults>
</compile_context>

<pallas_src>
import functools
import math

import jax
import jax.numpy as jnp
from jax.experimental import pallas as pl
from jax.experimental.pallas import tpu as pltpu

# ---------------- problem sizes (small, consistent with the module) ----------
B = 2            # batch
S = 8            # sequence length
H = 32           # hidden_size (all_head_size)
NUM_HEADS = 4    # num_attention_heads
HEAD_SIZE = H // NUM_HEADS
T = 3            # number of "tasks" / graphs in the attention mask
LN_EPS = 1e-12   # BERT LayerNorm eps


# ---------------- Pallas kernel ----------------------------------------------
def _bert_gma_kernel(x_ref, mask_ref, wqkv_ref, bqkv_ref, whh_ref, vecs_ref,
                     out_ref, *, batch, seq, hidden, num_heads, head_size,
                     num_tasks):
  f32 = jnp.float32
  x = x_ref[...]                      # [B*S, H]
  mask = mask_ref[...]                # [B, T, S, S]
  w_qkv = wqkv_ref[...]               # [H, 3H]  == [wq | wk | wv]
  b_qkv = bqkv_ref[...]               # [1, 3H]
  w_vt = whh_ref[0]                   # [H, H]   value_task weight
  w_o = whh_ref[1]                    # [H, H]   BertSelfOutput dense weight
  b_vt = vecs_ref[0:1, :]             # [1, H]
  wst = vecs_ref[1:2, :]              # [1, H]   folded (wkt @ wqt)^T
  b_o = vecs_ref[2:3, :]              # [1, H]
  gamma = vecs_ref[3:4, :]            # [1, H]
  beta = vecs_ref[4:5, :]             # [1, H]

  # ---- fused Q/K/V projection: one MXU matmul --------------------------------
  qkv = jnp.dot(x, w_qkv, preferred_element_type=f32) + b_qkv      # [B*S, 3H]

  # ---- head-batched layout [nh*B, S, dh] (leading-axis concat only) ----------
  def split_heads(base):
    parts = []
    for h in range(num_heads):
      lo = base + h * head_size
      parts.append(qkv[:, lo:lo + head_size].reshape(batch, seq, head_size))
    return jnp.concatenate(parts, axis=0)          # row index = h*B + b

  q_all = split_heads(0)
  k_all = split_heads(hidden)
  v_all = split_heads(2 * hidden)

  inv_sqrt_dh = 1.0 / math.sqrt(head_size)

  # ---- ONE batched score einsum over (head, batch) ---------------------------
  s = jnp.einsum("bqd,bkd->bqk", q_all, k_all,
                 preferred_element_type=f32) * inv_sqrt_dh         # [nh*B, S, S]

  # broadcast-add per-task mask, ONE fused softmax over keys
  mask_rep = jnp.concatenate([mask] * num_heads, axis=0)           # [nh*B, T, S, S]
  s4 = s[:, None, :, :] + mask_rep                                 # [nh*B, T, S, S]
  m = jnp.max(s4, axis=-1, keepdims=True)
  e = jnp.exp(s4 - m)
  p = e * pl.reciprocal(jnp.sum(e, axis=-1, keepdims=True), approx=True)
  p3 = p.reshape(num_heads * batch, num_tasks * seq, seq)          # [nh*B, T*S, S]

  # ---- ONE batched P @ V ------------------------------------------------------
  ctx = jnp.einsum("bek,bkd->bed", p3, v_all,
                   preferred_element_type=f32)                     # [nh*B, T*S, dh]
  ctx4 = ctx.reshape(num_heads, batch, num_tasks * seq, head_size)
  ctx_full = jnp.concatenate([ctx4[h] for h in range(num_heads)],
                             axis=-1)                              # [B, T*S, H]

  # ---- task aggregation -------------------------------------------------------
  # value_task projection (key_task is folded into wst -> no kt matmul, no bkt)
  ctx2 = ctx_full.reshape(batch * num_tasks * seq, hidden)         # [B*T*S, H]
  vt4 = (jnp.dot(ctx2, w_vt, preferred_element_type=f32) + b_vt
         ).reshape(batch, num_tasks, seq, hidden)                  # [B, T, S, H]

  # task logits via VPU mul + lane reduce; constant bias folds out of softmax
  ctx_t = ctx_full.reshape(batch, num_tasks, seq, hidden)          # [B, T, S, H]
  st = jnp.sum(ctx_t * wst, axis=-1, keepdims=True)                # [B, T, S, 1]
  mt = jnp.max(st, axis=1, keepdims=True)
  et = jnp.exp(st - mt)
  pt = et / jnp.sum(et, axis=1, keepdims=True)                     # exact recip (48 logits)

  attn = jnp.sum(pt * vt4, axis=1)                                 # [B, S, H]
  attn = attn.reshape(batch * seq, hidden)                         # [B*S, H]

  # ---- fused BertSelfOutput: dense + residual + LayerNorm ---------------------
  y = jnp.dot(attn, w_o, preferred_element_type=f32) + b_o + x
  mu = jnp.mean(y, axis=-1, keepdims=True)
  var = jnp.mean(jnp.square(y - mu), axis=-1, keepdims=True)
  y = (y - mu) * jax.lax.rsqrt(var + LN_EPS)
  out_ref[...] = (y * gamma + beta).astype(out_ref.dtype)


# ---------------- wrapper -----------------------------------------------------
def bert_graph_mask_attention(hidden_states, attention_mask, params):
  """hidden_states: [B,S,H] f32, attention_mask: [B,T,S,S] f32 -> [B,S,H]."""
  Bb, Ss, Hh = hidden_states.shape
  Tt = attention_mask.shape[1]
  nh = NUM_HEADS
  dh = Hh // nh

  x_flat = hidden_states.reshape(Bb * Ss, Hh)
  # lane-aligned input streams: each slab is used whole or via leading-dim /
  # sublane-row indexing inside the kernel.
  w_qkv = jnp.concatenate([params["wq"], params["wk"], params["wv"]], axis=1)
  b_qkv = jnp.concatenate([params["bq"], params["bk"], params["bv"]], axis=1)
  w_hh = jnp.stack([params["wvt"], params["wo"]], axis=0)              # [2, H, H]
  wst = (params["wkt"] @ params["wqt"]).reshape(1, Hh)                 # fold kt∘qt
  vecs = jnp.concatenate([params["bvt"], wst, params["bo"],
                          params["gamma"], params["beta"]], axis=0)    # [5, H]

  kernel = functools.partial(_bert_gma_kernel, batch=Bb, seq=Ss, hidden=Hh,
                             num_heads=nh, head_size=dh, num_tasks=Tt)

  out2d = pl.pallas_call(
      kernel,
      out_shape=jax.ShapeDtypeStruct((Bb * Ss, Hh), jnp.float32),
      grid_spec=pltpu.PrefetchScalarGridSpec(
          num_scalar_prefetch=0,
          grid=(1,),                       # whole (toy-sized) problem per step
          in_specs=[
              pl.BlockSpec((Bb * Ss, Hh), lambda i: (0, 0)),            # x
              pl.BlockSpec((Bb, Tt, Ss, Ss), lambda i: (0, 0, 0, 0)),   # mask
              pl.BlockSpec((Hh, 3 * Hh), lambda i: (0, 0)),             # W_qkv
              pl.BlockSpec((1, 3 * Hh), lambda i: (0, 0)),              # b_qkv
              pl.BlockSpec((2, Hh, Hh), lambda i: (0, 0, 0)),           # [wvt, wo]
              pl.BlockSpec((5, Hh), lambda i: (0, 0)),                  # row vecs
          ],
          out_specs=pl.BlockSpec((Bb * Ss, Hh), lambda i: (0, 0)),
      ),
      compiler_params=pltpu.CompilerParams(
          dimension_semantics=("arbitrary",)),
  )(x_flat, attention_mask, w_qkv, b_qkv, w_hh, vecs)
  return out2d.reshape(Bb, Ss, Hh)


# ---------------- pure-JAX reference (mirrors the PyTorch forward) ------------
def reference_forward(x, mask, p):
  Bb, Ss, Hh = x.shape
  nh, dh = NUM_HEADS, HEAD_SIZE
  q = x @ p["wq"] + p["bq"]
  k = x @ p["wk"] + p["bk"]
  v = x @ p["wv"] + p["bv"]
  split = lambda t: t.reshape(Bb, Ss, nh, dh).transpose(0, 2, 1, 3)
  q, k, v = split(q), split(k), split(v)
  scores = jnp.einsum("bhqd,bhkd->bhqk", q, k) / math.sqrt(dh)
  scores = scores[:, :, None] + mask[:, None]              # [B,nh,T,S,S]
  probs = jax.nn.softmax(scores, axis=-1)
  ctx = jnp.einsum("bhtqk,bhkd->bhtqd", probs, v)          # [B,nh,T,S,dh]
  ctx = ctx.transpose(0, 3, 2, 1, 4).reshape(Bb, Ss, mask.shape[1], Hh)
  kt = ctx @ p["wkt"] + p["bkt"]
  vt = ctx @ p["wvt"] + p["bvt"]
  ts = (kt @ p["wqt"])[..., 0] + p["bqt"][0, 0]            # [B,S,T]
  tp = jax.nn.softmax(ts, axis=-1)
  attn = jnp.einsum("bsth,bst->bsh", vt, tp)               # [B,S,H]
  # BertSelfOutput: dense + dropout(identity) + LayerNorm(residual)
  y = attn @ p["wo"] + p["bo"] + x
  mu = jnp.mean(y, axis=-1, keepdims=True)
  var = jnp.mean(jnp.square(y - mu), axis=-1, keepdims=True)
  return (y - mu) * jax.lax.rsqrt(var + LN_EPS) * p["gamma"] + p["beta"]


# ---------------- main --------------------------------------------------------
if __name__ == "__main__":
  keys = jax.random.split(jax.random.PRNGKey(0), 18)

  def lin(kw, kb, din, dout, scale=0.05):
    # weight stored directly in [in, out] layout (== PyTorch W.T)
    w = jax.random.normal(kw, (din, dout), jnp.float32) * scale
    b = jax.random.normal(kb, (1, dout), jnp.float32) * scale
    return w, b

  wq, bq = lin(keys[0], keys[1], H, H)
  wk, bk = lin(keys[2], keys[3], H, H)
  wv, bv = lin(keys[4], keys[5], H, H)
  wkt, bkt = lin(keys[6], keys[7], H, H)
  wvt, bvt = lin(keys[8], keys[9], H, H)
  wqt, bqt = lin(keys[10], keys[11], H, 1)
  wo, bo = lin(keys[12], keys[13], H, H)
  gamma = 1.0 + 0.05 * jax.random.normal(keys[14], (1, H), jnp.float32)
  beta = 0.05 * jax.random.normal(keys[15], (1, H), jnp.float32)
  params = dict(wq=wq, bq=bq, wk=wk, bk=bk, wv=wv, bv=bv,
                wkt=wkt, bkt=bkt, wvt=wvt, bvt=bvt, wqt=wqt, bqt=bqt,
                wo=wo, bo=bo, gamma=gamma, beta=beta)

  hidden_states = jax.random.normal(keys[16], (B, S, H), jnp.float32)
  # additive mask in {0, -10000} like BERT-style masks, per task
  mask_bits = jax.random.bernoulli(keys[17], 0.8, (B, T, S, S))
  attention_mask = jnp.where(mask_bits, 0.0, -10000.0).astype(jnp.float32)

  out = bert_graph_mask_attention(hidden_states, attention_mask, params)
  out = jax.block_until_ready(out)

  ref = reference_forward(hidden_states, attention_mask, params)
  assert out.shape == (B, S, H)
  # Tolerance covers the EUP approx-reciprocal used only for the large key
  # softmax; every other path (task softmax, LayerNorm) is exact.
  max_err = float(jnp.max(jnp.abs(out - ref)))
  assert jnp.allclose(out, ref, atol=2e-3, rtol=2e-3), max_err

  # TODO(synk): dropout (attention_probs & self-output) modeled as identity
  # (eval mode); head_mask / encoder_hidden_states / output_attentions paths
  # not implemented (the key_task∘query_task fold requires
  # output_attentions=False); BertSelfOutput uses standard HF semantics
  # (dense -> dropout -> LayerNorm(x + input)) since it is not defined in the
  # provided spec.
  print("KERNEL_OK")
</pallas_src>

<mosaic_0001>
module attributes {stable_mosaic.version = 11 : i64} {
  func.func @_bert_gma_kernel(%arg0: i32, %arg1: memref<16x32xf32, #tpu.memory_space<vmem>>, %arg2: memref<2x3x8x8xf32, #tpu.memory_space<vmem>>, %arg3: memref<32x96xf32, #tpu.memory_space<vmem>>, %arg4: memref<1x96xf32, #tpu.memory_space<vmem>>, %arg5: memref<2x32x32xf32, #tpu.memory_space<vmem>>, %arg6: memref<5x32xf32, #tpu.memory_space<vmem>>, %arg7: memref<16x32xf32, #tpu.memory_space<vmem>>) attributes {dimension_semantics = [#tpu.dimension_semantics<arbitrary>], iteration_bounds = array<i64: 1>, scalar_prefetch = 0 : i64, scratch_operands = 0 : i64, tpu.core_type = #tpu.core_type<tc>, window_params = [{pipeline_mode = #tpu.pipeline_mode<synchronous>, transform_indices = @transform_0, window_bounds = array<i64: 16, 32>}, {pipeline_mode = #tpu.pipeline_mode<synchronous>, transform_indices = @transform_1, window_bounds = array<i64: 2, 3, 8, 8>}, {pipeline_mode = #tpu.pipeline_mode<synchronous>, transform_indices = @transform_2, window_bounds = array<i64: 32, 96>}, {pipeline_mode = #tpu.pipeline_mode<synchronous>, transform_indices = @transform_3, window_bounds = array<i64: 1, 96>}, {pipeline_mode = #tpu.pipeline_mode<synchronous>, transform_indices = @transform_4, window_bounds = array<i64: 2, 32, 32>}, {pipeline_mode = #tpu.pipeline_mode<synchronous>, transform_indices = @transform_5, window_bounds = array<i64: 5, 32>}, {pipeline_mode = #tpu.pipeline_mode<synchronous>, transform_indices = @transform_6, window_bounds = array<i64: 16, 32>}]} {
    %c0 = arith.constant 0 : index
    %c0_0 = arith.constant 0 : index
    %0 = vector.load %arg1[%c0, %c0_0] : memref<16x32xf32, #tpu.memory_space<vmem>>, vector<16x32xf32>
    %c0_1 = arith.constant 0 : index
    %c0_2 = arith.constant 0 : index
    %c0_3 = arith.constant 0 : index
    %c0_4 = arith.constant 0 : index
    %1 = vector.load %arg2[%c0_1, %c0_2, %c0_3, %c0_4] : memref<2x3x8x8xf32, #tpu.memory_space<vmem>>, vector<2x3x8x8xf32>
    %c0_5 = arith.constant 0 : index
    %c0_6 = arith.constant 0 : index
    %2 = vector.load %arg3[%c0_5, %c0_6] : memref<32x96xf32, #tpu.memory_space<vmem>>, vector<32x96xf32>
    %c0_7 = arith.constant 0 : index
    %c0_8 = arith.constant 0 : index
    %3 = vector.load %arg4[%c0_7, %c0_8] : memref<1x96xf32, #tpu.memory_space<vmem>>, vector<1x96xf32>
    %c0_9 = arith.constant 0 : index
    %c0_10 = arith.constant 0 : index
    %c0_11 = arith.constant 0 : index
    %4 = vector.load %arg5[%c0_9, %c0_10, %c0_11] : memref<2x32x32xf32, #tpu.memory_space<vmem>>, vector<1x32x32xf32>
    %5 = vector.shape_cast %4 : vector<1x32x32xf32> to vector<32x32xf32>
    %c1 = arith.constant 1 : index
    %c0_12 = arith.constant 0 : index
    %c0_13 = arith.constant 0 : index
    %6 = vector.load %arg5[%c1, %c0_12, %c0_13] : memref<2x32x32xf32, #tpu.memory_space<vmem>>, vector<1x32x32xf32>
    %7 = vector.shape_cast %6 : vector<1x32x32xf32> to vector<32x32xf32>
    %c0_14 = arith.constant 0 : index
    %c0_15 = arith.constant 0 : index
    %8 = vector.load %arg6[%c0_14, %c0_15] : memref<5x32xf32, #tpu.memory_space<vmem>>, vector<1x32xf32>
    %c1_16 = arith.constant 1 : index
    %c0_17 = arith.constant 0 : index
    %9 = vector.load %arg6[%c1_16, %c0_17] : memref<5x32xf32, #tpu.memory_space<vmem>>, vector<1x32xf32>
    %c2 = arith.constant 2 : index
    %c0_18 = arith.constant 0 : index
    %10 = vector.load %arg6[%c2, %c0_18] : memref<5x32xf32, #tpu.memory_space<vmem>>, vector<1x32xf32>
    %c3 = arith.constant 3 : index
    %c0_19 = arith.constant 0 : index
    %11 = vector.load %arg6[%c3, %c0_19] : memref<5x32xf32, #tpu.memory_space<vmem>>, vector<1x32xf32>
    %c4 = arith.constant 4 : index
    %c0_20 = arith.constant 0 : index
    %12 = vector.load %arg6[%c4, %c0_20] : memref<5x32xf32, #tpu.memory_space<vmem>>, vector<1x32xf32>
    %cst = arith.constant dense<0.000000e+00> : vector<16x96xf32>
    %13 = tpu.matmul %0, %2, %cst {dimension_numbers = #tpu.dot_dimension_numbers<[1], [0], [0], [1], [0, 0, 1, 1], [], []>} : vector<16x32xf32>, vector<32x96xf32>, vector<16x96xf32> -> vector<16x96xf32>
    %14 = vector.broadcast %3 : vector<1x96xf32> to vector<16x96xf32>
    %15 = arith.addf %13, %14 : vector<16x96xf32>
    %16 = vector.extract_strided_slice %15 {offsets = [0, 0], sizes = [16, 8], strides = [1, 1]} : vector<16x96xf32> to vector<16x8xf32>
    %17 = vector.shape_cast %16 : vector<16x8xf32> to vector<2x8x8xf32>
    %18 = vector.extract_strided_slice %15 {offsets = [0, 8], sizes = [16, 8], strides = [1, 1]} : vector<16x96xf32> to vector<16x8xf32>
    %19 = vector.shape_cast %18 : vector<16x8xf32> to vector<2x8x8xf32>
    %20 = vector.extract_strided_slice %15 {offsets = [0, 16], sizes = [16, 8], strides = [1, 1]} : vector<16x96xf32> to vector<16x8xf32>
    %21 = vector.shape_cast %20 : vector<16x8xf32> to vector<2x8x8xf32>
    %22 = vector.extract_strided_slice %15 {offsets = [0, 24], sizes = [16, 8], strides = [1, 1]} : vector<16x96xf32> to vector<16x8xf32>
    %23 = vector.shape_cast %22 : vector<16x8xf32> to vector<2x8x8xf32>
    %24 = tpu.concatenate %17, %19, %21, %23 in 0 : vector<2x8x8xf32>, vector<2x8x8xf32>, vector<2x8x8xf32>, vector<2x8x8xf32> -> vector<8x8x8xf32>
    %25 = vector.extract_strided_slice %15 {offsets = [0, 32], sizes = [16, 8], strides = [1, 1]} : vector<16x96xf32> to vector<16x8xf32>
    %26 = vector.shape_cast %25 : vector<16x8xf32> to vector<2x8x8xf32>
    %27 = vector.extract_strided_slice %15 {offsets = [0, 40], sizes = [16, 8], strides = [1, 1]} : vector<16x96xf32> to vector<16x8xf32>
    %28 = vector.shape_cast %27 : vector<16x8xf32> to vector<2x8x8xf32>
    %29 = vector.extract_strided_slice %15 {offsets = [0, 48], sizes = [16, 8], strides = [1, 1]} : vector<16x96xf32> to vector<16x8xf32>
    %30 = vector.shape_cast %29 : vector<16x8xf32> to vector<2x8x8xf32>
    %31 = vector.extract_strided_slice %15 {offsets = [0, 56], sizes = [16, 8], strides = [1, 1]} : vector<16x96xf32> to vector<16x8xf32>
    %32 = vector.shape_cast %31 : vector<16x8xf32> to vector<2x8x8xf32>
    %33 = tpu.concatenate %26, %28, %30, %32 in 0 : vector<2x8x8xf32>, vector<2x8x8xf32>, vector<2x8x8xf32>, vector<2x8x8xf32> -> vector<8x8x8xf32>
    %34 = vector.extract_strided_slice %15 {offsets = [0, 64], sizes = [16, 8], strides = [1, 1]} : vector<16x96xf32> to vector<16x8xf32>
    %35 = vector.shape_cast %34 : vector<16x8xf32> to vector<2x8x8xf32>
    %36 = vector.extract_strided_slice %15 {offsets = [0, 72], sizes = [16, 8], strides = [1, 1]} : vector<16x96xf32> to vector<16x8xf32>
    %37 = vector.shape_cast %36 : vector<16x8xf32> to vector<2x8x8xf32>
    %38 = vector.extract_strided_slice %15 {offsets = [0, 80], sizes = [16, 8], strides = [1, 1]} : vector<16x96xf32> to vector<16x8xf32>
    %39 = vector.shape_cast %38 : vector<16x8xf32> to vector<2x8x8xf32>
    %40 = vector.extract_strided_slice %15 {offsets = [0, 88], sizes = [16, 8], strides = [1, 1]} : vector<16x96xf32> to vector<16x8xf32>
    %41 = vector.shape_cast %40 : vector<16x8xf32> to vector<2x8x8xf32>
    %42 = tpu.concatenate %35, %37, %39, %41 in 0 : vector<2x8x8xf32>, vector<2x8x8xf32>, vector<2x8x8xf32>, vector<2x8x8xf32> -> vector<8x8x8xf32>
    "tpu.trace_start"() <{level = 10 : i32, message = "bqd,bkd->bqk"}> : () -> ()
    %cst_21 = arith.constant dense<0.000000e+00> : vector<8x8x8xf32>
    %43 = tpu.matmul %24, %33, %cst_21 {dimension_numbers = #tpu.dot_dimension_numbers<[2], [2], [1], [1], [0, 0, 0, 1, 1, 1], [0], [0]>} : vector<8x8x8xf32>, vector<8x8x8xf32>, vector<8x8x8xf32> -> vector<8x8x8xf32>
    "tpu.trace_stop"() : () -> ()
    %cst_22 = arith.constant 0.353553385 : f32
    %44 = vector.broadcast %cst_22 : f32 to vector<8x8x8xf32>
    %45 = arith.mulf %43, %44 : vector<8x8x8xf32>
    %46 = tpu.concatenate %1, %1, %1, %1 in 0 : vector<2x3x8x8xf32>, vector<2x3x8x8xf32>, vector<2x3x8x8xf32>, vector<2x3x8x8xf32> -> vector<8x3x8x8xf32>
    %47 = vector.shape_cast %45 : vector<8x8x8xf32> to vector<8x1x8x8xf32>
    %48 = vector.broadcast %47 : vector<8x1x8x8xf32> to vector<8x3x8x8xf32>
    %49 = arith.addf %48, %46 : vector<8x3x8x8xf32>
    %cst_23 = arith.constant dense<0xFF800000> : vector<8x3x8xf32>
    %50 = vector.multi_reduction <maximumf>, %49, %cst_23 [3] : vector<8x3x8x8xf32> to vector<8x3x8xf32>
    %51 = vector.shape_cast %50 : vector<8x3x8xf32> to vector<8x3x8x1xf32>
    %52 = vector.broadcast %51 : vector<8x3x8x1xf32> to vector<8x3x8x8xf32>
    %53 = arith.subf %49, %52 : vector<8x3x8x8xf32>
    %54 = math.exp %53 : vector<8x3x8x8xf32>
    %cst_24 = arith.constant dense<0.000000e+00> : vector<8x3x8xf32>
    %55 = vector.multi_reduction <add>, %54, %cst_24 [3] : vector<8x3x8x8xf32> to vector<8x3x8xf32>
    %56 = vector.shape_cast %55 : vector<8x3x8xf32> to vector<8x3x8x1xf32>
    %57 = tpu.reciprocal %56 {approx = true} : vector<8x3x8x1xf32> -> vector<8x3x8x1xf32>
    %58 = vector.broadcast %57 : vector<8x3x8x1xf32> to vector<8x3x8x8xf32>
    %59 = arith.mulf %54, %58 : vector<8x3x8x8xf32>
    %60 = vector.shape_cast %59 : vector<8x3x8x8xf32> to vector<8x24x8xf32>
    "tpu.trace_start"() <{level = 10 : i32, message = "bek,bkd->bed"}> : () -> ()
    %cst_25 = arith.constant dense<0.000000e+00> : vector<8x24x8xf32>
    %61 = tpu.matmul %60, %42, %cst_25 {dimension_numbers = #tpu.dot_dimension_numbers<[2], [1], [1], [2], [0, 0, 0, 1, 1, 2], [0], [0]>} : vector<8x24x8xf32>, vector<8x8x8xf32>, vector<8x24x8xf32> -> vector<8x24x8xf32>
    "tpu.trace_stop"() : () -> ()
    %62 = vector.shape_cast %61 : vector<8x24x8xf32> to vector<4x2x24x8xf32>
    %63 = vector.extract_strided_slice %62 {offsets = [0, 0, 0, 0], sizes = [1, 2, 24, 8], strides = [1, 1, 1, 1]} : vector<4x2x24x8xf32> to vector<1x2x24x8xf32>
    %64 = vector.shape_cast %63 : vector<1x2x24x8xf32> to vector<2x24x8xf32>
    %65 = vector.extract_strided_slice %62 {offsets = [1, 0, 0, 0], sizes = [1, 2, 24, 8], strides = [1, 1, 1, 1]} : vector<4x2x24x8xf32> to vector<1x2x24x8xf32>
    %66 = vector.shape_cast %65 : vector<1x2x24x8xf32> to vector<2x24x8xf32>
    %67 = vector.extract_strided_slice %62 {offsets = [2, 0, 0, 0], sizes = [1, 2, 24, 8], strides = [1, 1, 1, 1]} : vector<4x2x24x8xf32> to vector<1x2x24x8xf32>
    %68 = vector.shape_cast %67 : vector<1x2x24x8xf32> to vector<2x24x8xf32>
    %69 = vector.extract_strided_slice %62 {offsets = [3, 0, 0, 0], sizes = [1, 2, 24, 8], strides = [1, 1, 1, 1]} : vector<4x2x24x8xf32> to vector<1x2x24x8xf32>
    %70 = vector.shape_cast %69 : vector<1x2x24x8xf32> to vector<2x24x8xf32>
    %71 = tpu.concatenate %64, %66, %68, %70 in 2 : vector<2x24x8xf32>, vector<2x24x8xf32>, vector<2x24x8xf32>, vector<2x24x8xf32> -> vector<2x24x32xf32>
    %72 = vector.shape_cast %71 : vector<2x24x32xf32> to vector<48x32xf32>
    %cst_26 = arith.constant dense<0.000000e+00> : vector<48x32xf32>
    %73 = tpu.matmul %72, %5, %cst_26 {dimension_numbers = #tpu.dot_dimension_numbers<[1], [0], [0], [1], [0, 0, 1, 1], [], []>} : vector<48x32xf32>, vector<32x32xf32>, vector<48x32xf32> -> vector<48x32xf32>
    %74 = vector.broadcast %8 : vector<1x32xf32> to vector<48x32xf32>
    %75 = arith.addf %73, %74 : vector<48x32xf32>
    %76 = vector.shape_cast %75 : vector<48x32xf32> to vector<2x3x8x32xf32>
    %77 = vector.shape_cast %71 : vector<2x24x32xf32> to vector<2x3x8x32xf32>
    %78 = vector.shape_cast %9 : vector<1x32xf32> to vector<1x1x1x32xf32>
    %79 = vector.broadcast %78 : vector<1x1x1x32xf32> to vector<2x3x8x32xf32>
    %80 = arith.mulf %77, %79 : vector<2x3x8x32xf32>
    %cst_27 = arith.constant dense<0.000000e+00> : vector<2x3x8xf32>
    %81 = vector.multi_reduction <add>, %80, %cst_27 [3] : vector<2x3x8x32xf32> to vector<2x3x8xf32>
    %82 = vector.shape_cast %81 : vector<2x3x8xf32> to vector<2x3x8x1xf32>
    %cst_28 = arith.constant dense<0xFF800000> : vector<2x8x1xf32>
    %83 = vector.multi_reduction <maximumf>, %82, %cst_28 [1] : vector<2x3x8x1xf32> to vector<2x8x1xf32>
    %84 = vector.shape_cast %83 : vector<2x8x1xf32> to vector<2x1x8x1xf32>
    %85 = vector.broadcast %84 : vector<2x1x8x1xf32> to vector<2x3x8x1xf32>
    %86 = arith.subf %82, %85 : vector<2x3x8x1xf32>
    %87 = math.exp %86 : vector<2x3x8x1xf32>
    %cst_29 = arith.constant dense<0.000000e+00> : vector<2x8x1xf32>
    %88 = vector.multi_reduction <add>, %87, %cst_29 [1] : vector<2x3x8x1xf32> to vector<2x8x1xf32>
    %89 = vector.shape_cast %88 : vector<2x8x1xf32> to vector<2x1x8x1xf32>
    %90 = vector.broadcast %89 : vector<2x1x8x1xf32> to vector<2x3x8x1xf32>
    %91 = arith.divf %87, %90 : vector<2x3x8x1xf32>
    %92 = vector.broadcast %91 : vector<2x3x8x1xf32> to vector<2x3x8x32xf32>
    %93 = arith.mulf %92, %76 : vector<2x3x8x32xf32>
    %cst_30 = arith.constant dense<0.000000e+00> : vector<2x8x32xf32>
    %94 = vector.multi_reduction <add>, %93, %cst_30 [1] : vector<2x3x8x32xf32> to vector<2x8x32xf32>
    %95 = vector.shape_cast %94 : vector<2x8x32xf32> to vector<16x32xf32>
    %cst_31 = arith.constant dense<0.000000e+00> : vector<16x32xf32>
    %96 = tpu.matmul %95, %7, %cst_31 {dimension_numbers = #tpu.dot_dimension_numbers<[1], [0], [0], [1], [0, 0, 1, 1], [], []>} : vector<16x32xf32>, vector<32x32xf32>, vector<16x32xf32> -> vector<16x32xf32>
    %97 = vector.broadcast %10 : vector<1x32xf32> to vector<16x32xf32>
    %98 = arith.addf %96, %97 : vector<16x32xf32>
    %99 = arith.addf %98, %0 : vector<16x32xf32>
    %cst_32 = arith.constant dense<0.000000e+00> : vector<16xf32>
    %100 = vector.multi_reduction <add>, %99, %cst_32 [1] : vector<16x32xf32> to vector<16xf32>
    %101 = vector.shape_cast %100 : vector<16xf32> to vector<16x1xf32>
    %cst_33 = arith.constant 3.200000e+01 : f32
    %102 = vector.broadcast %cst_33 : f32 to vector<16x1xf32>
    %103 = arith.divf %101, %102 : vector<16x1xf32>
    %104 = vector.broadcast %103 : vector<16x1xf32> to vector<16x32xf32>
    %105 = arith.subf %99, %104 : vector<16x32xf32>
    %106 = arith.mulf %105, %105 : vector<16x32xf32>
    %cst_34 = arith.constant dense<0.000000e+00> : vector<16xf32>
    %107 = vector.multi_reduction <add>, %106, %cst_34 [1] : vector<16x32xf32> to vector<16xf32>
    %108 = vector.shape_cast %107 : vector<16xf32> to vector<16x1xf32>
    %cst_35 = arith.constant 3.200000e+01 : f32
    %109 = vector.broadcast %cst_35 : f32 to vector<16x1xf32>
    %110 = arith.divf %108, %109 : vector<16x1xf32>
    %111 = vector.broadcast %103 : vector<16x1xf32> to vector<16x32xf32>
    %112 = arith.subf %99, %111 : vector<16x32xf32>
    %cst_36 = arith.constant 9.99999996E-13 : f32
    %113 = vector.broadcast %cst_36 : f32 to vector<16x1xf32>
    %114 = arith.addf %110, %113 : vector<16x1xf32>
    %115 = math.rsqrt %114 : vector<16x1xf32>
    %116 = vector.broadcast %115 : vector<16x1xf32> to vector<16x32xf32>
    %117 = arith.mulf %112, %116 : vector<16x32xf32>
    %118 = vector.broadcast %11 : vector<1x32xf32> to vector<16x32xf32>
    %119 = arith.mulf %117, %118 : vector<16x32xf32>
    %120 = vector.broadcast %12 : vector<1x32xf32> to vector<16x32xf32>
    %121 = arith.addf %119, %120 : vector<16x32xf32>
    %c0_37 = arith.constant 0 : index
    %c0_38 = arith.constant 0 : index
    %122 = vector.load %arg7[%c0_37, %c0_38] : memref<16x32xf32, #tpu.memory_space<vmem>>, vector<16x32xf32>
    tpu.vector_store %arg7[%c0_37, %c0_38], %121 {strides = array<i32>} : memref<16x32xf32, #tpu.memory_space<vmem>>, vector<16x32xf32>,
    return
  }
  func.func @transform_0(%arg0: i32) -> (i32, i32) {
    %c0_i32 = arith.constant 0 : i32
    %c0_i32_0 = arith.constant 0 : i32
    %c0_i32_1 = arith.constant 0 : i32
    return %c0_i32, %c0_i32_0 : i32, i32
  }
  func.func @transform_1(%arg0: i32) -> (i32, i32, i32, i32) {
    %c0_i32 = arith.constant 0 : i32
    %c0_i32_0 = arith.constant 0 : i32
    %c0_i32_1 = arith.constant 0 : i32
    %c0_i32_2 = arith.constant 0 : i32
    %c0_i32_3 = arith.constant 0 : i32
    return %c0_i32, %c0_i32_0, %c0_i32_1, %c0_i32_2 : i32, i32, i32, i32
  }
  func.func @transform_2(%arg0: i32) -> (i32, i32) {
    %c0_i32 = arith.constant 0 : i32
    %c0_i32_0 = arith.constant 0 : i32
    %c0_i32_1 = arith.constant 0 : i32
    return %c0_i32, %c0_i32_0 : i32, i32
  }
  func.func @transform_3(%arg0: i32) -> (i32, i32) {
    %c0_i32 = arith.constant 0 : i32
    %c0_i32_0 = arith.constant 0 : i32
    %c0_i32_1 = arith.constant 0 : i32
    return %c0_i32, %c0_i32_0 : i32, i32
  }
  func.func @transform_4(%arg0: i32) -> (i32, i32, i32) {
    %c0_i32 = arith.constant 0 : i32
    %c0_i32_0 = arith.constant 0 : i32
    %c0_i32_1 = arith.constant 0 : i32
    %c0_i32_2 = arith.constant 0 : i32
    return %c0_i32, %c0_i32_0, %c0_i32_1 : i32, i32, i32
  }
  func.func @transform_5(%arg0: i32) -> (i32, i32) {
    %c0_i32 = arith.constant 0 : i32
    %c0_i32_0 = arith.constant 0 : i32
    %c0_i32_1 = arith.constant 0 : i32
    return %c0_i32, %c0_i32_0 : i32, i32
  }
  func.func @transform_6(%arg0: i32) -> (i32, i32) {
    %c0_i32 = arith.constant 0 : i32
    %c0_i32_0 = arith.constant 0 : i32
    %c0_i32_1 = arith.constant 0 : i32
    return %c0_i32, %c0_i32_0 : i32, i32
  }
}

</mosaic_0001>

<bundles_post_ra>
// kernel: tpu_custom_call.1
= control target key start
LH: loop header
LB: loop body
LE: loop exit
PB: predicated region body
PF: predicated region fallthrough
CT: control target
= control target key end

     0   :  { %11 = vsyncpa [#allocation3], 0  ;;  %s3422_s0 = inlined_call_operand.hbm [shape: f32[16,32], index: 0, kind: input, shape index: {}]   ;;  %s3423_s1 = inlined_call_operand.hbm [shape: f32[2,3,8,8], index: 1, kind: input, shape index: {}]   ;;  %s3424_s2 = inlined_call_operand.hbm [shape: f32[32,96], index: 2, kind: input, shape index: {}]   ;;  %s3425_s3 = inlined_call_operand.vmem [shape: f32[1,96], index: 3, kind: input, shape index: {}]   ;;  %s3426_s4 = inlined_call_operand.hbm [shape: f32[2,32,32], index: 4, kind: input, shape index: {}]   ;;  %s3427_s5 = inlined_call_operand.vmem [shape: f32[5,32], index: 5, kind: input, shape index: {}]   ;;  %s3428_s6 = inlined_call_operand.hbm [shape: f32[16,32], index: 6, kind: output, shape index: {}]  }
   0x1   :  { %12 = vsyncpa [#allocation6], 0 }
   0x2   :  { %13 = vsyncpa [#allocation9], 0 }
   0x3   :  { %14 = vsyncpa [#allocation4], 0  ;;  %s2818_s21 = smov [#allocation5]   ;;  %s2819_s23 = smov [#allocation2]  }
   0x4   :  { %s32_s22 = sshll.u32 %s2818_s21, 4  ;;  %s20_s24 = sshll.u32 %s2819_s23, 4  ;;  %s33_s22 = int_to_ptr.vmem [resolvable:$true] %s32_s22  ;;  %s21_s24 = int_to_ptr.vmem [resolvable:$true] %s20_s24 }
   0x5   :  { %s2718_s25 = scalar_lea.vmem %s33_s22, 768  ;;  %p2723_p1 = scmp.lt.s32.totalorder %s33_s22, %s33_s22 }
   0x6   :  { %p2719_p0 = scmp.ne.s32.totalorder %s33_s22, %s2718_s25  ;;  %p2724_p2 = scmp.lt.s32.totalorder %s2718_s25, %s2718_s25 }
   0x8   :  { %p2725_p3 = por %p2724_p2, %p2723_p1 }
   0xa   :  { %p2726_p4 = pnand %p2725_p3, %p2719_p0 }
   0xc   :  { %2729 = shalt.err (!%p2726_p4)
}
   0xd   :  { %s2820_s26 = smov 128   ;;  %s2821_s27 = smov 8  }
   0xe   :  { %38 = dma.hbm_to_vmem [thread:$0]  %s3423_s1, 768, %s33_s22, [#allocation6], %s2820_s26, %s2820_s26, %s2821_s27  }
   0xf   :  { %s2738_s30 = scalar_lea.vmem %s21_s24, 256  ;;  %p2743_p6 = scmp.lt.s32.totalorder %s21_s24, %s21_s24 }
  0x10   :  { %p2739_p5 = scmp.ne.s32.totalorder %s21_s24, %s2738_s30  ;;  %p2744_p7 = scmp.lt.s32.totalorder %s2738_s30, %s2738_s30 }
  0x12   :  { %p2745_p8 = por %p2744_p7, %p2743_p6 }
  0x14   :  { %p2746_p9 = pnand %p2745_p8, %p2739_p5 }
  0x16   :  { %2749 = shalt.err (!%p2746_p9)
}
  0x17   :  { %26 = dma.hbm_to_vmem [thread:$0]  %s3422_s0, 256, %s21_s24, [#allocation3], %s2820_s26, %s2820_s26, %s2821_s27  }
  0x18   :  { %s2822_s9 = smov [#allocation7]   ;;  %s2823_s11 = smov [#allocation8]  }
  0x19   :  { %s44_s10 = sshll.u32 %s2822_s9, 4  ;;  %s58_s12 = sshll.u32 %s2823_s11, 4  ;;  %s45_s10 = int_to_ptr.vmem [resolvable:$true] %s44_s10  ;;  %s59_s12 = int_to_ptr.vmem [resolvable:$true] %s58_s12 }
  0x1a   :  { %s2758_s1 = scalar_lea.vmem %s45_s10, 512  ;;  %p2763_p11 = scmp.lt.s32.totalorder %s45_s10, %s45_s10 }
  0x1b   :  { %p2759_p10 = scmp.ne.s32.totalorder %s45_s10, %s2758_s1  ;;  %p2764_p12 = scmp.lt.s32.totalorder %s2758_s1, %s2758_s1 }
  0x1d   :  { %p2765_p13 = por %p2764_p12, %p2763_p11 }
  0x1f   :  { %p2766_p0 = pnand %p2765_p13, %p2759_p10 }
  0x21   :  { %2769 = shalt.err (!%p2766_p0)
}
  0x22   :  { %50 = dma.hbm_to_vmem [thread:$0]  %s3424_s2, 512, %s45_s10, [#allocation6], %s2820_s26, %s2820_s26, %s2821_s27  }
  0x23   :  { %s2778_s0 = scalar_lea.vmem %s59_s12, 1024  ;;  %p2783_p2 = scmp.lt.s32.totalorder %s59_s12, %s59_s12 }
  0x24   :  { %p2779_p1 = scmp.ne.s32.totalorder %s59_s12, %s2778_s0  ;;  %p2784_p3 = scmp.lt.s32.totalorder %s2778_s0, %s2778_s0 }
  0x26   :  { %p2785_p4 = por %p2784_p3, %p2783_p2 }
  0x28   :  { %p2786_p5 = pnand %p2785_p4, %p2779_p1 }
  0x2a   :  { %2789 = shalt.err (!%p2786_p5)
}
  0x2b   :  { %64 = dma.hbm_to_vmem [thread:$0]  %s3426_s4, 1024, %s59_s12, [#allocation9], %s2820_s26, %s2820_s26, %s2821_s27  }
  0x2c   :  { %2810 = dma.done.wait [#allocation3], 256  }
  0x2d   :  { %2811 = vsyncadd [#allocation3], 4294967040 }
  0x2e   :  { %2812 = dma.done.wait [#allocation6], 1280  }
  0x2f   :  { %2813 = vsyncadd [#allocation6], 4294966016 }
  0x30   :  { %2814 = dma.done.wait [#allocation9], 1024  }
  0x31   :  { %2815 = vsyncadd [#allocation9], 4294966272  ;;  %vm112_vm0 = vcmask 261120   ;;  %v90_v0 = vld [vmem:[#allocation7 + $0x18] sm:$0xff]  ;;  %v89_v1 = vld [vmem:[#allocation7 + $0x10] sm:$0xff]  ;;  %v2824_v7 = vmov 0.0  }
  0x32   :  { %2409 = vmatprep.subr.mxu0 %v90_v0  ;;  %v79_v2 = vld [vmem:[#allocation2] sm:$0xff]  ;;  %v88_v3 = vld [vmem:[#allocation7 + $0x8] sm:$0xff]  ;;  %2420 = vmatprep.subr.mxu1 %v2824_v7  ;;  %s2825_s17 = smov 112   ;;  %s2826_s18 = smov 120   ;;  %vm2827_vm1 = vmmov 0   ;;  %vm210_vm2 = vcmask 64512  }
  0x33   :  { %2410 = vmatpush3.msra.mxu0 %v90_v0  ;;  %2417 = vmatprep.mubr.msk.f32.mxu0 %vm112_vm0, %v79_v2  ;;  %v87_v4 = vld [vmem:[#allocation7] sm:$0xff]  ;;  %v80_v5 = vld [vmem:[#allocation2 + $0x8] sm:$0xff]  ;;  %s2828_s19 = smov 104   ;;  %s2830_s20 = smov 64   ;;  %v2969_v29 = vld [vmem:[#allocation5 + $0x8] sm:$0xff]  ;;  %vm1927_vm3 = vcmask 130048  }
  0x34   :  { %2411 = vmatprep.subr.mxu0 %v89_v1  ;;  %v2283_v8 = vld [vmem:[%s3425_s3] ss:$0 sm:$0xff]  ;;  %2422 = vmatprep.mubr.msk.f32.mxu1 %vm2827_vm1, %v2824_v7  ;;  %s2829_s3 = smov 96   ;;  %v2971_v30 = vld [vmem:[#allocation5] sm:$0xff]  ;;  %v2990_v43 = vld [vmem:[#allocation5 + $0x28] sm:$0xff]  ;;  %s2831_s21 = smov 16  }
  0x35   :  { %2412 = vmatpush3.msra.mxu0 %v89_v1  ;;  %v2973_v33 = vld [vmem:[#allocation5 + $0x10] sm:$0xff]  ;;  %v2981_v37 = vld [vmem:[#allocation5 + $0x20] sm:$0xff]  ;;  %v2992_v44 = vld [vmem:[#allocation5 + $0x18] sm:$0xff]  ;;  %s2832_s22 = smov 24   ;;  %vm1934_vm4 = vcmask 195584   ;;  %s2833_s11 = smov [#allocation10]  }
  0x36   :  { %2413 = vmatprep.subr.mxu0 %v88_v3  ;;  %s2269_s12 = sshll.u32 %s2833_s11, 4  ;;  %s2270_s12 = int_to_ptr.vmem [resolvable:$true] %s2269_s12 }
  0x37   :  { %2414 = vmatpush3.msra.mxu0 %v88_v3  ;;  %s2790_s1 = scalar_lea.vmem %s2270_s12, 256  ;;  %p2795_p7 = scmp.lt.s32.totalorder %s2270_s12, %s2270_s12 }
  0x38   :  { %2415 = vmatprep.subr.mxu0 %v87_v4  ;;  %p2791_p6 = scmp.ne.s32.totalorder %s2270_s12, %s2790_s1  ;;  %p2796_p8 = scmp.lt.s32.totalorder %s2790_s1, %s2790_s1 }
  0x39   :  { %2416 = vmatpush3.msra.mxu0 %v87_v4 }
  0x3a   :  { %2418 = vmatmul.mubr.msk.f32.vlgmr.msra.gmra.mxu0 %vm112_vm0, %v80_v5  ;;  %2440 = vmatprep.subr.mxu0 %v2824_v7  ;;  %p2797_p9 = por %p2796_p8, %p2795_p7 }
  0x3b   :  { %2442 = vmatprep.mubr.msk.f32.mxu0 %vm2827_vm1, %v2824_v7 }
  0x3c   :  { %p2798_p10 = pnand %p2797_p9, %p2791_p6 }
  0xfa   :  { %v2419_v6 = vpop.f32.mrf.mxu0 }
  0xfb   :  { %v191_v11 = vadd.f32 %v2419_v6, %v2283_v8 }
  0xfc   :  { %v185_v9 = vpop.f32.mrf.mxu0 }
  0xfd   :  { %v186_v10 = vadd.f32 %v2283_v8, %v185_v9 }
  0xff   :  { %200 = vrot.lane.b32.xlu1 %v186_v10, %s2825_s17  ;;  %196 = vrot.lane.b32.xlu0 %v186_v10, %s2826_s18 }
 0x103   :  { %202 = vrot.lane.b32.xlu1 %v191_v11, %s2825_s17  ;;  %198 = vrot.lane.b32.xlu0 %v191_v11, %s2826_s18 }
 0x107   :  { %206 = vrot.lane.b32.xlu1 %v191_v11, %s2828_s19  ;;  %204 = vrot.lane.b32.xlu0 %v186_v10, %s2828_s19 }
 0x10b   :  { %285 = vrot.lane.b32.xlu1 %v191_v11, %s2829_s3  ;;  %208 = vrot.lane.b32.xlu0 %v186_v10, %s2829_s3 }
 0x171   :  { %v2904_v12 = vpop.permute.xlu1 %200  ;;  %v197_v13 = vpop.permute.xlu0 %196 }
 0x172   :  { %361 = vrot.lane.b32.xlu0 %v197_v13, %s2829_s3 }
 0x175   :  { %v2906_v14 = vpop.permute.xlu0 %198  ;;  %v2908_v15 = vpop.permute.xlu1 %202 }
 0x176   :  { %513 = vrot.lane.b32.xlu0 %v2904_v12, %s2829_s3  ;;  %437 = vrot.lane.b32.xlu1 %v2906_v14, %s2829_s3 }
 0x179   :  { %v2912_v16 = vpop.permute.xlu0 %204  ;;  %v2916_v17 = vpop.permute.xlu1 %206 }
 0x17a   :  { %589 = vrot.lane.b32.xlu1 %v2908_v15, %s2829_s3  ;;  %665 = vrot.lane.b32.xlu0 %v2912_v16, %s2829_s3 }
 0x17d   :  { %v209_v18 = vpop.permute.xlu0 %208  ;;  %v286_v19 = vpop.permute.xlu1 %285 }
 0x17e   :  { %741 = vrot.lane.b32.xlu1 %v2916_v17, %s2829_s3  ;;  %1113 = vrot.lane.b32.xlu0 %v186_v10, %s2830_s20 }
 0x17f   :  { %2421 = vmatpush3.xpose.msk.msra.mxu1 %vm210_vm2, %v209_v18 }
 0x180   :  { %2425 = vmatprep.subr.mxu1 %v2824_v7 }
 0x182   :  { %2423 = vmatmul.mubr.msk.f32.vlgmr.msra.gmra.mxu1 %vm210_vm2, %v186_v10  ;;  %1205 = vrot.lane.b32.xlu1 %v191_v11, %s2830_s20 }
 0x183   :  { %1297 = vrot.lane.b32.xlu0 %v197_v13, %s2830_s20  ;;  %2426 = vmatpush3.xpose.msk.msra.mxu1 %vm210_vm2, %v286_v19 }
 0x184   :  { %2427 = vmatprep.mubr.msk.f32.mxu1 %vm2827_vm1, %v2824_v7  ;;  %2430 = vmatprep.subr.mxu1 %v2824_v7 }
 0x186   :  { %2428 = vmatmul.mubr.msk.f32.vlgmr.msra.gmra.mxu1 %vm210_vm2, %v191_v11 }
 0x187   :  { %2432 = vmatprep.mubr.msk.f32.mxu1 %vm2827_vm1, %v2824_v7 }
 0x1e4   :  { %v362_v20 = vpop.permute.xlu0 %361 }
 0x1e5   :  { %2431 = vmatpush3.xpose.msk.msra.mxu1 %vm210_vm2, %v362_v20 }
 0x1e6   :  { %2435 = vmatprep.subr.mxu1 %v2824_v7 }
 0x1e8   :  { %v438_v21 = vpop.permute.xlu1 %437  ;;  %2433 = vmatmul.mubr.msk.f32.vlgmr.msra.gmra.mxu1 %vm210_vm2, %v197_v13  ;;  %v514_v22 = vpop.permute.xlu0 %513 }
 0x1e9   :  { %2436 = vmatpush3.xpose.msk.msra.mxu1 %vm210_vm2, %v438_v21  ;;  %2441 = vmatpush3.xpose.msk.msra.mxu0 %vm210_vm2, %v514_v22 }
 0x1ea   :  { %2437 = vmatprep.mubr.msk.f32.mxu1 %vm2827_vm1, %v2824_v7  ;;  %2445 = vmatprep.subr.mxu1 %v2824_v7 }
 0x1eb   :  { %2450 = vmatprep.subr.mxu0 %v2824_v7 }
 0x1ec   :  { %v590_v23 = vpop.permute.xlu1 %589  ;;  %2438 = vmatmul.mubr.msk.f32.vlgmr.msra.gmra.mxu1 %vm210_vm2, %v2906_v14  ;;  %2443 = vmatmul.mubr.msk.f32.vlgmr.msra.gmra.mxu0 %vm210_vm2, %v2904_v12  ;;  %v666_v24 = vpop.permute.xlu0 %665 }
 0x1ed   :  { %2446 = vmatpush3.xpose.msk.msra.mxu1 %vm210_vm2, %v590_v23  ;;  %2451 = vmatpush3.xpose.msk.msra.mxu0 %vm210_vm2, %v666_v24 }
 0x1ee   :  { %2447 = vmatprep.mubr.msk.f32.mxu1 %vm2827_vm1, %v2824_v7  ;;  %2452 = vmatprep.mubr.msk.f32.mxu0 %vm2827_vm1, %v2824_v7 }
 0x1ef   :  { %2455 = vmatprep.subr.mxu1 %v2824_v7  ;;  %2460 = vmatprep.subr.mxu0 %v2824_v7 }
 0x1f0   :  { %v742_v25 = vpop.permute.xlu1 %741  ;;  %2448 = vmatmul.mubr.msk.f32.vlgmr.msra.gmra.mxu1 %vm210_vm2, %v2908_v15  ;;  %2453 = vmatmul.mubr.msk.f32.vlgmr.msra.gmra.mxu0 %vm210_vm2, %v2912_v16  ;;  %v1114_v26 = vpop.permute.xlu0 %1113 }
 0x1f1   :  { %2456 = vmatpush3.xpose.msk.msra.mxu1 %vm210_vm2, %v742_v25  ;;  %2461 = vmatpush3.msra.mxu0 %v1114_v26 }
 0x1f2   :  { %2457 = vmatprep.mubr.msk.f32.mxu1 %vm2827_vm1, %v2824_v7  ;;  %2471 = vmatprep.subr.mxu1 %v2824_v7 }
 0x1f3   :  { %2462 = vmatprep.mubr.msk.f32.mxu0 %vm2827_vm1, %v2824_v7  ;;  %2482 = vmatprep.subr.mxu0 %v2824_v7 }
 0x1f4   :  { %v1206_v27 = vpop.permute.xlu1 %1205  ;;  %2458 = vmatmul.mubr.msk.f32.vlgmr.msra.gmra.mxu1 %vm210_vm2, %v2916_v17 }
 0x1f5   :  { %2472 = vmatpush3.msra.mxu1 %v1206_v27  ;;  %2473 = vmatprep.mubr.msk.f32.mxu1 %vm2827_vm1, %v2824_v7 }
 0x1f6   :  { %2493 = vmatprep.subr.mxu1 %v2824_v7 }
 0x242   :  { %v281_v28 = vpop.f32.mrf.mxu1 }
 0x243   :  { %v817_v31 = vmul.f32 0.35355338, %v281_v28 }
 0x244   :  { %v2424_v32 = vpop.f32.mrf.mxu1 }
 0x245   :  { %v2976_v34 = vadd.f32 %v817_v31, %v2969_v29  ;;  %v2979_v35 = vadd.f32 %v817_v31, %v2971_v30  ;;  %v2988_v41 = vadd.f32 %v817_v31, %v2973_v33 }
 0x246   :  { %v357_v36 = vpop.f32.mrf.mxu1 }
 0x247   :  { %v818_v38 = vmul.f32 0.35355338, %v357_v36  ;;  %v852_v39 = vsel %vm210_vm2, %v2976_v34, -inf  ;;  %v849_v40 = vsel %vm210_vm2, %v2979_v35, -inf  ;;  %v855_v46 = vsel %vm210_vm2, %v2988_v41, -inf }
 0x248   :  { %853 = vmax.xlane.f32.xlu1 %v852_v39  ;;  %850 = vmax.xlane.f32.xlu0 %v849_v40  ;;  %v2429_v42 = vpop.f32.mrf.mxu1 }
 0x249   :  { %v2995_v45 = vadd.f32 %v818_v38, %v2981_v37  ;;  %v3002_v48 = vadd.f32 %v818_v38, %v2990_v43  ;;  %v3005_v49 = vadd.f32 %v818_v38, %v2992_v44 }
 0x24b   :  { %v861_v47 = vsel %vm210_vm2, %v2995_v45, -inf  ;;  %v864_v50 = vsel %vm210_vm2, %v3002_v48, -inf  ;;  %v858_v51 = vsel %vm210_vm2, %v3005_v49, -inf }
 0x24c   :  { %856 = vmax.xlane.f32.xlu0 %v855_v46  ;;  %862 = vmax.xlane.f32.xlu1 %v861_v47 }
 0x250   :  { %865 = vmax.xlane.f32.xlu1 %v864_v50  ;;  %859 = vmax.xlane.f32.xlu0 %v858_v51 }
 0x2a8   :  { %v433_v52 = vpop.f32.mrf.mxu1 }
 0x2a9   :  { %v819_v53 = vmul.f32 0.35355338, %v433_v52 }
 0x2aa   :  { %v2434_v54 = vpop.f32.mrf.mxu1 }
 0x2ab   :  { %v3012_v55 = vadd.f32 %v819_v53, %v2971_v30  ;;  %v3017_v60 = vadd.f32 %v819_v53, %v2969_v29  ;;  %v3023_v2 = vadd.f32 %v819_v53, %v2973_v33 }
 0x2ac   :  { %v509_v56 = vpop.f32.mrf.mxu1  ;;  %v585_v57 = vpop.f32.mrf.mxu0 }
 0x2ad   :  { %v820_v58 = vmul.f32 0.35355338, %v509_v56  ;;  %v867_v59 = vsel %vm210_vm2, %v3012_v55, -inf  ;;  %v821_v3 = vmul.f32 0.35355338, %v585_v57  ;;  %v870_v4 = vsel %vm210_vm2, %v3017_v60, -inf  ;;  %v3101_v57 = vpop.permute.xlu0 %1297 }
 0x2ae   :  { %868 = vmax.xlane.f32.xlu0 %v867_v59  ;;  %v2439_v61 = vpop.f32.mrf.mxu1  ;;  %v2444_v62 = vpop.f32.mrf.mxu0  ;;  %v873_v11 = vsel %vm210_vm2, %v3023_v2, -inf }
 0x2af   :  { %v3020_v63 = vadd.f32 %v820_v58, %v2992_v44  ;;  %v3030_v6 = vadd.f32 %v820_v58, %v2981_v37  ;;  %v3037_v19 = vadd.f32 %v820_v58, %v2990_v43  ;;  %v3040_v20 = vadd.f32 %v821_v3, %v2971_v30 }
 0x2b0   :  { %v661_v0 = vpop.f32.mrf.mxu1  ;;  %v737_v1 = vpop.f32.mrf.mxu0  ;;  %v3050_v25 = vadd.f32 %v821_v3, %v2969_v29  ;;  %v3053_v26 = vadd.f32 %v821_v3, %v2973_v33 }
 0x2b1   :  { %v876_v5 = vsel %vm210_vm2, %v3020_v63, -inf  ;;  %v822_v13 = vmul.f32 0.35355338, %v661_v0  ;;  %v879_v18 = vsel %vm210_vm2, %v3030_v6, -inf  ;;  %v882_v22 = vsel %vm210_vm2, %v3037_v19, -inf }
 0x2b2   :  { %871 = vmax.xlane.f32.xlu0 %v870_v4  ;;  %877 = vmax.xlane.f32.xlu1 %v876_v5  ;;  %v2449_v8 = vpop.f32.mrf.mxu1  ;;  %v2454_v9 = vpop.f32.mrf.mxu0  ;;  %v885_v23 = vsel %vm210_vm2, %v3040_v20, -inf  ;;  %v823_v27 = vmul.f32 0.35355338, %v737_v1  ;;  %v888_v31 = vsel %vm210_vm2, %v3050_v25, -inf  ;;  %v891_v36 = vsel %vm210_vm2, %v3053_v26, -inf }
 0x2b3   :  { %v3047_v24 = vadd.f32 %v822_v13, %v2992_v44  ;;  %v3060_v32 = vadd.f32 %v822_v13, %v2981_v37  ;;  %v3067_v40 = vadd.f32 %v822_v13, %v2990_v43 }
 0x2b4   :  { %v813_v10 = vpop.f32.mrf.mxu1  ;;  %v3070_v42 = vadd.f32 %v823_v27, %v2971_v30  ;;  %v3080_v51 = vadd.f32 %v823_v27, %v2969_v29  ;;  %v3090_v54 = vadd.f32 %v823_v27, %v2973_v33 }
 0x2b5   :  { %v894_v28 = vsel %vm210_vm2, %v3047_v24, -inf  ;;  %v824_v38 = vmul.f32 0.35355338, %v813_v10  ;;  %v897_v39 = vsel %vm210_vm2, %v3060_v32, -inf  ;;  %v900_v46 = vsel %vm210_vm2, %v3067_v40, -inf }
 0x2b6   :  { %874 = vmax.xlane.f32.xlu0 %v873_v11  ;;  %880 = vmax.xlane.f32.xlu1 %v879_v18  ;;  %v2459_v21 = vpop.f32.mrf.mxu1  ;;  %v903_v47 = vsel %vm210_vm2, %v3070_v42, -inf  ;;  %v906_v52 = vsel %vm210_vm2, %v3080_v51, -inf }
 0x2b7   :  { %v3077_v50 = vadd.f32 %v824_v38, %v2992_v44  ;;  %v3087_v53 = vadd.f32 %v824_v38, %v2981_v37  ;;  %v909_v44 = vsel %vm210_vm2, %v3090_v54, -inf  ;;  %v3097_v56 = vadd.f32 %v824_v38, %v2990_v43 }
 0x2b9   :  { %v912_v30 = vsel %vm210_vm2, %v3077_v50, -inf  ;;  %v915_v29 = vsel %vm210_vm2, %v3087_v53, -inf  ;;  %v918_v37 = vsel %vm210_vm2, %v3097_v56, -inf }
 0x2ba   :  { %883 = vmax.xlane.f32.xlu1 %v882_v22  ;;  %886 = vmax.xlane.f32.xlu0 %v885_v23 }
 0x2be   :  { %895 = vmax.xlane.f32.xlu1 %v894_v28  ;;  %889 = vmax.xlane.f32.xlu0 %v888_v31 }
 0x2c2   :  { %898 = vmax.xlane.f32.xlu1 %v897_v39  ;;  %892 = vmax.xlane.f32.xlu0 %v891_v36 }
 0x2c6   :  { %901 = vmax.xlane.f32.xlu1 %v900_v46  ;;  %904 = vmax.xlane.f32.xlu0 %v903_v47 }
 0x2ca   :  { %913 = vmax.xlane.f32.xlu1 %v912_v30  ;;  %907 = vmax.xlane.f32.xlu0 %v906_v52 }
 0x2ce   :  { %916 = vmax.xlane.f32.xlu1 %v915_v29  ;;  %910 = vmax.xlane.f32.xlu0 %v909_v44 }
 0x2d1   :  { %v851_v33 = vpop.xlane.xlu0 %850  ;;  %v854_v59 = vpop.xlane.xlu1 %853 }
 0x2d2   :  { %919 = vmax.xlane.f32.xlu0 %v918_v37  ;;  %v921_v43 = vsub.f32 %v2979_v35, %v851_v33  ;;  %v922_v62 = vsub.f32 %v2976_v34, %v854_v59 }
 0x2d4   :  { %v945_v1 = vmul.f32 1.442695, %v921_v43  ;;  %v947_v4 = vmul.f32 1.442695, %v922_v62 }
 0x2d5   :  { %v857_v58 = vpop.xlane.xlu0 %856  ;;  %v863_v0 = vpop.xlane.xlu1 %862 }
 0x2d6   :  { %v925_v5 = vsub.f32 %v2995_v45, %v863_v0  ;;  %2592 = vpow2.f32 %v945_v1 }
 0x2d7   :  { %2594 = vpow2.f32 %v947_v4 }
 0x2d8   :  { %v953_v10 = vmul.f32 1.442695, %v925_v5 }
 0x2d9   :  { %v860_v61 = vpop.xlane.xlu0 %859  ;;  %v866_v9 = vpop.xlane.xlu1 %865 }
 0x2da   :  { %v924_v3 = vsub.f32 %v3005_v49, %v860_v61  ;;  %v926_v35 = vsub.f32 %v3002_v48, %v866_v9 }
 0x2dc   :  { %v951_v8 = vmul.f32 1.442695, %v924_v3  ;;  %v955_v34 = vmul.f32 1.442695, %v926_v35 }
 0x2de   :  { %2596 = vpow2.f32 %v951_v8 }
 0x2df   :  { %1389 = vrot.lane.b32.xlu1 %v2906_v14, %s2830_s20  ;;  %v923_v14 = vsub.f32 %v2988_v41, %v857_v58  ;;  %2598 = vpow2.f32 %v953_v10 }
 0x2e3   :  { %v3113_v11 = vpop.eup %2592 }
 0x2e4   :  { %v3115_v49 = vpop.eup %2594  ;;  %v993_v45 = vsel %vm210_vm2, %v3113_v11, 0.0 }
 0x2e5   :  { %v996_v48 = vsel %vm210_vm2, %v3115_v49, 0.0 }
 0x2e8   :  { %1481 = vrot.lane.b32.xlu0 %v2904_v12, %s2830_s20  ;;  %v949_v12 = vmul.f32 1.442695, %v923_v14 }
 0x2ea   :  { %2600 = vpow2.f32 %v949_v12 }
 0x2eb   :  { %2602 = vpow2.f32 %v955_v34  ;;  %v3119_v41 = vpop.eup %2596 }
 0x2ec   :  { %v3121_v13 = vpop.eup %2598  ;;  %v1002_v18 = vsel %vm210_vm2, %v3119_v41, 0.0 }
 0x2ed   :  { %v1005_v23 = vsel %vm210_vm2, %v3121_v13, 0.0 }
 0x2f7   :  { %v3127_v21 = vpop.eup %2600 }
 0x2f8   :  { %v999_v22 = vsel %vm210_vm2, %v3127_v21, 0.0  ;;  %v3133_v27 = vpop.eup %2602 }
 0x2f9   :  { %v1008_v28 = vsel %vm210_vm2, %v3133_v27, 0.0 }
 0x303   :  { %994 = vadd.xlane.f32.xlu1 %v993_v45 }
 0x307   :  { %997 = vadd.xlane.f32.xlu0 %v996_v48  ;;  %1003 = vadd.xlane.f32.xlu1 %v1002_v18 }
 0x30b   :  { %1000 = vadd.xlane.f32.xlu0 %v999_v22  ;;  %1006 = vadd.xlane.f32.xlu1 %v1005_v23 }
 0x30f   :  { %1009 = vadd.xlane.f32.xlu1 %v1008_v28 }
 0x337   :  { %v869_v31 = vpop.xlane.xlu0 %868 }
 0x338   :  { %v927_v36 = vsub.f32 %v3012_v55, %v869_v31 }
 0x33a   :  { %v957_v38 = vmul.f32 1.442695, %v927_v36 }
 0x33b   :  { %v878_v39 = vpop.xlane.xlu1 %877  ;;  %v872_v46 = vpop.xlane.xlu0 %871 }
 0x33c   :  { %2604 = vpow2.f32 %v957_v38  ;;  %v928_v47 = vsub.f32 %v3017_v60, %v872_v46  ;;  %v930_v1 = vsub.f32 %v3020_v63, %v878_v39 }
 0x33e   :  { %v959_v30 = vmul.f32 1.442695, %v928_v47  ;;  %v963_v9 = vmul.f32 1.442695, %v930_v1 }
 0x33f   :  { %v881_v52 = vpop.xlane.xlu1 %880  ;;  %v875_v29 = vpop.xlane.xlu0 %874 }
 0x340   :  { %v929_v44 = vsub.f32 %v3023_v2, %v875_v29  ;;  %2606 = vpow2.f32 %v959_v30  ;;  %v931_v10 = vsub.f32 %v3030_v6, %v881_v52 }
 0x342   :  { %v961_v37 = vmul.f32 1.442695, %v929_v44  ;;  %v965_v45 = vmul.f32 1.442695, %v931_v10 }
 0x343   :  { %v884_v33 = vpop.xlane.xlu1 %883  ;;  %v887_v58 = vpop.xlane.xlu0 %886 }
 0x344   :  { %v933_v59 = vsub.f32 %v3040_v20, %v887_v58  ;;  %2608 = vpow2.f32 %v961_v37  ;;  %v932_v48 = vsub.f32 %v3037_v19, %v884_v33 }
 0x346   :  { %v969_v43 = vmul.f32 1.442695, %v933_v59 }
 0x347   :  { %v3141_v55 = vpop.xlane.xlu1 %895  ;;  %v890_v61 = vpop.xlane.xlu0 %889 }
 0x348   :  { %v934_v62 = vsub.f32 %v3050_v25, %v890_v61  ;;  %2610 = vpow2.f32 %v969_v43  ;;  %v936_v43 = vsub.f32 %v3047_v24, %v3141_v55 }
 0x349   :  { %v3144_v0 = vpop.eup %2604 }
 0x34a   :  { %v971_v60 = vmul.f32 1.442695, %v934_v62  ;;  %v1011_v2 = vsel %vm210_vm2, %v3144_v0, 0.0 }
 0x34b   :  { %v899_v3 = vpop.xlane.xlu1 %898  ;;  %1012 = vadd.xlane.f32.xlu0 %v1011_v2  ;;  %v893_v4 = vpop.xlane.xlu0 %892 }
 0x34c   :  { %v937_v20 = vsub.f32 %v3060_v32, %v899_v3  ;;  %v935_v5 = vsub.f32 %v3053_v26, %v893_v4  ;;  %2612 = vpow2.f32 %v971_v60  ;;  %v975_v60 = vmul.f32 1.442695, %v936_v43 }
 0x34d   :  { %v3151_v14 = vpop.eup %2606 }
 0x34e   :  { %v977_v25 = vmul.f32 1.442695, %v937_v20  ;;  %v973_v8 = vmul.f32 1.442695, %v935_v5  ;;  %v1014_v35 = vsel %vm210_vm2, %v3151_v14, 0.0 }
 0x34f   :  { %v902_v12 = vpop.xlane.xlu1 %901  ;;  %1015 = vadd.xlane.f32.xlu0 %v1014_v35  ;;  %v905_v34 = vpop.xlane.xlu0 %904 }
 0x350   :  { %2614 = vpow2.f32 %v977_v25  ;;  %v938_v63 = vsub.f32 %v3067_v40, %v902_v12  ;;  %v967_v40 = vmul.f32 1.442695, %v932_v48  ;;  %v939_v28 = vsub.f32 %v3070_v42, %v905_v34 }
 0x351   :  { %2616 = vpow2.f32 %v973_v8  ;;  %v3157_v32 = vpop.eup %2608 }
 0x352   :  { %v979_v26 = vmul.f32 1.442695, %v938_v63  ;;  %2618 = vpow2.f32 %v963_v9  ;;  %v1017_v6 = vsel %vm210_vm2, %v3157_v32, 0.0  ;;  %v981_v46 = vmul.f32 1.442695, %v939_v28 }
 0x353   :  { %v914_v18 = vpop.xlane.xlu1 %913  ;;  %1018 = vadd.xlane.f32.xlu0 %v1017_v6  ;;  %v908_v23 = vpop.xlane.xlu0 %907 }
 0x354   :  { %2620 = vpow2.f32 %v979_v26  ;;  %v940_v47 = vsub.f32 %v3080_v51, %v908_v23  ;;  %v942_v2 = vsub.f32 %v3077_v50, %v914_v18 }
 0x355   :  { %v3162_v22 = vpop.eup %2610  ;;  %2622 = vpow2.f32 %v965_v45 }
 0x356   :  { %v1029_v36 = vsel %vm210_vm2, %v3162_v22, 0.0  ;;  %2624 = vpow2.f32 %v967_v40  ;;  %v983_v44 = vmul.f32 1.442695, %v940_v47  ;;  %v987_v20 = vmul.f32 1.442695, %v942_v2 }
 0x357   :  { %v917_v31 = vpop.xlane.xlu1 %916  ;;  %1030 = vadd.xlane.f32.xlu0 %v1029_v36  ;;  %v911_v52 = vpop.xlane.xlu0 %910 }
 0x358   :  { %v943_v38 = vsub.f32 %v3087_v53, %v917_v31  ;;  %v941_v37 = vsub.f32 %v3090_v54, %v911_v52 }
 0x359   :  { %v3168_v19 = vpop.eup %2612 }
 0x35a   :  { %v989_v39 = vmul.f32 1.442695, %v943_v38  ;;  %v1032_v30 = vsel %vm210_vm2, %v3168_v19, 0.0  ;;  %v985_v61 = vmul.f32 1.442695, %v941_v37 }
 0x35b   :  { %1033 = vadd.xlane.f32.xlu1 %v1032_v30  ;;  %v920_v4 = vpop.xlane.xlu0 %919  ;;  %v1390_v6 = vpop.permute.xlu1 %1389 }
 0x35c   :  { %2626 = vpow2.f32 %v989_v39  ;;  %v944_v5 = vsub.f32 %v3097_v56, %v920_v4 }
 0x35d   :  { %v3173_v42 = vpop.eup %2614  ;;  %2628 = vpow2.f32 %v981_v46 }
 0x35e   :  { %v3175_v29 = vpop.eup %2616  ;;  %v1041_v53 = vsel %vm210_vm2, %v3173_v42, 0.0  ;;  %2630 = vpow2.f32 %v983_v44  ;;  %v991_v8 = vmul.f32 1.442695, %v944_v5 }
 0x35f   :  { %1042 = vadd.xlane.f32.xlu0 %v1041_v53  ;;  %v1035_v51 = vsel %vm210_vm2, %v3175_v29, 0.0  ;;  %v3182_v33 = vpop.eup %2618  ;;  %2632 = vpow2.f32 %v985_v61  ;;  %v1482_v23 = vpop.permute.xlu0 %1481 }
 0x360   :  { %1036 = vadd.xlane.f32.xlu1 %v1035_v51  ;;  %v1020_v54 = vsel %vm210_vm2, %v3182_v33, 0.0  ;;  %2634 = vpow2.f32 %v975_v60 }
 0x361   :  { %v3184_v58 = vpop.eup %2620  ;;  %2636 = vpow2.f32 %v987_v20 }
 0x362   :  { %v1044_v59 = vsel %vm210_vm2, %v3184_v58, 0.0  ;;  %v3192_v62 = vpop.eup %2622  ;;  %2638 = vpow2.f32 %v991_v8 }
 0x363   :  { %1045 = vadd.xlane.f32.xlu0 %v1044_v59  ;;  %v1023_v1 = vsel %vm210_vm2, %v3192_v62, 0.0  ;;  %v3197_v3 = vpop.eup %2624 }
 0x364   :  { %1021 = vadd.xlane.f32.xlu1 %v1020_v54  ;;  %v1026_v50 = vsel %vm210_vm2, %v3197_v3, 0.0 }
 0x368   :  { %1024 = vadd.xlane.f32.xlu1 %v1023_v1 }
 0x369   :  { %v3199_v24 = vpop.eup %2626 }
 0x36a   :  { %v1059_v55 = vsel %vm210_vm2, %v3199_v24, 0.0  ;;  %v3206_v25 = vpop.eup %2628 }
 0x36b   :  { %1060 = vadd.xlane.f32.xlu0 %v1059_v55  ;;  %v1047_v9 = vsel %vm210_vm2, %v3206_v25, 0.0  ;;  %v3210_v10 = vpop.eup %2630 }
 0x36c   :  { %1027 = vadd.xlane.f32.xlu1 %v1026_v50  ;;  %v1050_v12 = vsel %vm210_vm2, %v3210_v10, 0.0  ;;  %v3214_v56 = vpop.eup %2632 }
 0x36d   :  { %v1053_v35 = vsel %vm210_vm2, %v3214_v56, 0.0  ;;  %v3218_v63 = vpop.eup %2634 }
 0x36e   :  { %v1038_v34 = vsel %vm210_vm2, %v3218_v63, 0.0  ;;  %v3222_v26 = vpop.eup %2636 }
 0x36f   :  { %v1056_v45 = vsel %vm210_vm2, %v3222_v26, 0.0  ;;  %v3226_v48 = vpop.eup %2638 }
 0x370   :  { %1048 = vadd.xlane.f32.xlu1 %v1047_v9  ;;  %v1062_v18 = vsel %vm210_vm2, %v3226_v48, 0.0 }
 0x374   :  { %1051 = vadd.xlane.f32.xlu1 %v1050_v12 }
 0x378   :  { %1054 = vadd.xlane.f32.xlu1 %v1053_v35 }
 0x37c   :  { %1039 = vadd.xlane.f32.xlu1 %v1038_v34 }
 0x380   :  { %1057 = vadd.xlane.f32.xlu1 %v1056_v45 }
 0x381   :  { %1665 = vrot.lane.b32.xlu0 %v2912_v16, %s2830_s20 }
 0x384   :  { %1063 = vadd.xlane.f32.xlu1 %v1062_v18 }
 0x385   :  { %1757 = vrot.lane.b32.xlu0 %v2916_v17, %s2830_s20 }
 0x38c   :  { %v995_v40 = vpop.xlane.xlu1 %994 }
 0x38d   :  { %2640 = vrcp.f32 %v995_v40 }
 0x390   :  { %v1004_v28 = vpop.xlane.xlu1 %1003  ;;  %v998_v31 = vpop.xlane.xlu0 %997 }
 0x391   :  { %2642 = vrcp.f32 %v1004_v28 }
 0x392   :  { %2644 = vrcp.f32 %v998_v31 }
 0x394   :  { %v1007_v36 = vpop.xlane.xlu1 %1006  ;;  %v1001_v38 = vpop.xlane.xlu0 %1000 }
 0x395   :  { %2646 = vrcp.f32 %v1007_v36  ;;  %1573 = vrot.lane.b32.xlu1 %v2908_v15, %s2830_s20 }
 0x396   :  { %2648 = vrcp.f32 %v1001_v38 }
 0x398   :  { %v1010_v16 = vpop.xlane.xlu1 %1009 }
 0x399   :  { %2650 = vrcp.f32 %v1010_v16 }
 0x39a   :  { %v2641_v39 = vpop.eup %2640 }
 0x39b   :  { %v1089_v17 = vmul.f32 %v2641_v39, %v3113_v11 }
 0x39d   :  { %2463 = vmatmul.mubr.msk.f32.vlgmr.msra.gmra.mxu0 %vm210_vm2, %v1089_v17 }
 0x39e   :  { %v2643_v46 = vpop.eup %2642  ;;  %2483 = vmatpush3.msra.mxu0 %v3101_v57  ;;  %2465 = vmatprep.mubr.msk.f32.mxu0 %vm2827_vm1, %v2824_v7 }
 0x39f   :  { %v2645_v47 = vpop.eup %2644  ;;  %v1092_v30 = vmul.f32 %v2643_v46, %v3119_v41  ;;  %2504 = vmatprep.subr.mxu0 %v2824_v7 }
 0x3a0   :  { %v1090_v15 = vmul.f32 %v2645_v47, %v3115_v49 }
 0x3a1   :  { %2474 = vmatmul.mubr.msk.f32.vlgmr.msra.gmra.mxu1 %vm210_vm2, %v1092_v30 }
 0x3a2   :  { %v2647_v52 = vpop.eup %2646  ;;  %2466 = vmatmul.mubr.msk.f32.gmra.mxu0 %vm210_vm2, %v1090_v15  ;;  %2494 = vmatpush3.msra.mxu1 %v1390_v6 }
 0x3a3   :  { %v2649_v11 = vpop.eup %2648  ;;  %2468 = vmatprep.mubr.msk.f32.mxu0 %vm2827_vm1, %v2824_v7  ;;  %2476 = vmatprep.mubr.msk.f32.mxu1 %vm2827_vm1, %v2824_v7  ;;  %v1093_v57 = vmul.f32 %v2647_v52, %v3121_v13 }
 0x3a4   :  { %v1091_v41 = vmul.f32 %v2649_v11, %v3127_v21  ;;  %2515 = vmatprep.subr.mxu1 %v2824_v7 }
 0x3a5   :  { %2477 = vmatmul.mubr.msk.f32.gmra.mxu1 %vm210_vm2, %v1093_v57 }
 0x3a6   :  { %v2651_v49 = vpop.eup %2650  ;;  %2469 = vmatmul.mubr.msk.f32.gmra.mxu0 %vm210_vm2, %v1091_v41  ;;  %2479 = vmatprep.mubr.msk.f32.mxu1 %vm2827_vm1, %v2824_v7 }
 0x3a7   :  { %v1094_v53 = vmul.f32 %v2651_v49, %v3133_v27  ;;  %2484 = vmatprep.mubr.msk.f32.mxu0 %vm2827_vm1, %v2824_v7 }
 0x3a9   :  { %2480 = vmatmul.mubr.msk.f32.gmra.mxu1 %vm210_vm2, %v1094_v53 }
 0x3aa   :  { %2495 = vmatprep.mubr.msk.f32.mxu1 %vm2827_vm1, %v2824_v7 }
 0x3d4   :  { %v1013_v13 = vpop.xlane.xlu0 %1012 }
 0x3d5   :  { %2652 = vrcp.f32 %v1013_v13 }
 0x3d8   :  { %v1016_v21 = vpop.xlane.xlu0 %1015 }
 0x3d9   :  { %2654 = vrcp.f32 %v1016_v21 }
 0x3dc   :  { %v1019_v44 = vpop.xlane.xlu0 %1018 }
 0x3dd   :  { %2656 = vrcp.f32 %v1019_v44 }
 0x3e0   :  { %v1031_v37 = vpop.xlane.xlu0 %1030 }
 0x3e1   :  { %2658 = vrcp.f32 %v1031_v37 }
 0x3e2   :  { %v2653_v51 = vpop.eup %2652 }
 0x3e3   :  { %v1095_v59 = vmul.f32 %v2653_v51, %v3144_v0 }
 0x3e4   :  { %v1034_v27 = vpop.xlane.xlu1 %1033 }
 0x3e5   :  { %2485 = vmatmul.mubr.msk.f32.vlgmr.msra.gmra.mxu0 %vm210_vm2, %v1095_v59  ;;  %2660 = vrcp.f32 %v1034_v27 }
 0x3e6   :  { %2505 = vmatpush3.msra.mxu0 %v1482_v23  ;;  %2487 = vmatprep.mubr.msk.f32.mxu0 %vm2827_vm1, %v2824_v7  ;;  %v2655_v43 = vpop.eup %2654 }
 0x3e7   :  { %2526 = vmatprep.subr.mxu0 %v2824_v7  ;;  %v1096_v61 = vmul.f32 %v2655_v43, %v3151_v14 }
 0x3e8   :  { %v1043_v60 = vpop.xlane.xlu0 %1042 }
 0x3e9   :  { %v1037_v54 = vpop.xlane.xlu1 %1036  ;;  %2488 = vmatmul.mubr.msk.f32.gmra.mxu0 %vm210_vm2, %v1096_v61 }
 0x3ea   :  { %2662 = vrcp.f32 %v1037_v54  ;;  %v2657_v2 = vpop.eup %2656  ;;  %2490 = vmatprep.mubr.msk.f32.mxu0 %vm2827_vm1, %v2824_v7 }
 0x3eb   :  { %v1097_v0 = vmul.f32 %v2657_v2, %v3157_v32 }
 0x3ec   :  { %v1046_v55 = vpop.xlane.xlu0 %1045 }
 0x3ed   :  { %v1022_v1 = vpop.xlane.xlu1 %1021  ;;  %2491 = vmatmul.mubr.msk.f32.gmra.mxu0 %vm210_vm2, %v1097_v0 }
 0x3ee   :  { %2664 = vrcp.f32 %v1022_v1  ;;  %v2659_v4 = vpop.eup %2658  ;;  %2506 = vmatprep.mubr.msk.f32.mxu0 %vm2827_vm1, %v2824_v7 }
 0x3ef   :  { %v1101_v14 = vmul.f32 %v2659_v4, %v3162_v22 }
 0x3f1   :  { %v1025_v20 = vpop.xlane.xlu1 %1024  ;;  %2507 = vmatmul.mubr.msk.f32.vlgmr.msra.gmra.mxu0 %vm210_vm2, %v1101_v14 }
 0x3f2   :  { %2666 = vrcp.f32 %v1025_v20  ;;  %v2661_v5 = vpop.eup %2660  ;;  %2509 = vmatprep.mubr.msk.f32.mxu0 %vm2827_vm1, %v2824_v7 }
 0x3f3   :  { %v1102_v50 = vmul.f32 %v2661_v5, %v3168_v19 }
 0x3f4   :  { %v1061_v32 = vpop.xlane.xlu0 %1060 }
 0x3f5   :  { %v1028_v8 = vpop.xlane.xlu1 %1027  ;;  %2510 = vmatmul.mubr.msk.f32.gmra.mxu0 %vm210_vm2, %v1102_v50 }
 0x3f6   :  { %2668 = vrcp.f32 %v1028_v8  ;;  %2512 = vmatprep.mubr.msk.f32.mxu0 %vm2827_vm1, %v2824_v7 }
 0x3f7   :  { %v2663_v9 = vpop.eup %2662 }
 0x3f8   :  { %v1666_v22 = vpop.permute.xlu0 %1665  ;;  %v1103_v12 = vmul.f32 %v2663_v9, %v3175_v29 }
 0x3f9   :  { %v1049_v35 = vpop.xlane.xlu1 %1048  ;;  %2527 = vmatpush3.msra.mxu0 %v1666_v22 }
 0x3fa   :  { %2670 = vrcp.f32 %v1049_v35  ;;  %2513 = vmatmul.mubr.msk.f32.gmra.mxu0 %vm210_vm2, %v1103_v12 }
 0x3fb   :  { %v2665_v34 = vpop.eup %2664  ;;  %2528 = vmatprep.mubr.msk.f32.mxu0 %vm2827_vm1, %v2824_v7 }
 0x3fc   :  { %v1098_v19 = vmul.f32 %v2665_v34, %v3182_v33  ;;  %v1758_v47 = vpop.permute.xlu0 %1757  ;;  %v95_v34 = vld [vmem:[#allocation8 + $0x18] sm:$0xff] }
 0x3fd   :  { %v1052_v45 = vpop.xlane.xlu1 %1051  ;;  %2548 = vmatprep.subr.mxu0 %v95_v34 }
 0x3fe   :  { %2672 = vrcp.f32 %v1052_v45  ;;  %2496 = vmatmul.mubr.msk.f32.vlgmr.msra.gmra.mxu1 %vm210_vm2, %v1098_v19  ;;  %v94_v45 = vld [vmem:[#allocation8 + $0x10] sm:$0xff] }
 0x3ff   :  { %v2667_v18 = vpop.eup %2666  ;;  %2498 = vmatprep.mubr.msk.f32.mxu1 %vm2827_vm1, %v2824_v7 }
 0x400   :  { %v1099_v29 = vmul.f32 %v2667_v18, %v3192_v62 }
 0x401   :  { %v1055_v6 = vpop.xlane.xlu1 %1054 }
 0x402   :  { %2674 = vrcp.f32 %v1055_v6  ;;  %2499 = vmatmul.mubr.msk.f32.gmra.mxu1 %vm210_vm2, %v1099_v29  ;;  %v93_v29 = vld [vmem:[#allocation8 + $0x8] sm:$0xff]  ;;  %v92_v6 = vld [vmem:[#allocation8] sm:$0xff] }
 0x403   :  { %v2669_v23 = vpop.eup %2668  ;;  %2501 = vmatprep.mubr.msk.f32.mxu1 %vm2827_vm1, %v2824_v7 }
 0x404   :  { %v1100_v33 = vmul.f32 %v2669_v23, %v3197_v3 }
 0x405   :  { %v1040_v40 = vpop.xlane.xlu1 %1039 }
 0x406   :  { %2676 = vrcp.f32 %v1040_v40  ;;  %2502 = vmatmul.mubr.msk.f32.gmra.mxu1 %vm210_vm2, %v1100_v33 }
 0x407   :  { %v2671_v28 = vpop.eup %2670  ;;  %2517 = vmatprep.mubr.msk.f32.mxu1 %vm2827_vm1, %v2824_v7  ;;  %2678 = vrcp.f32 %v1043_v60 }
 0x408   :  { %v1107_v62 = vmul.f32 %v2671_v28, %v3206_v25  ;;  %2680 = vrcp.f32 %v1046_v55 }
 0x409   :  { %v1058_v31 = vpop.xlane.xlu1 %1057 }
 0x40a   :  { %2529 = vmatmul.mubr.msk.f32.vlgmr.msra.gmra.mxu0 %vm210_vm2, %v1107_v62  ;;  %2682 = vrcp.f32 %v1058_v31 }
 0x40b   :  { %v2673_v36 = vpop.eup %2672  ;;  %2531 = vmatprep.mubr.msk.f32.mxu0 %vm2827_vm1, %v2824_v7  ;;  %2684 = vrcp.f32 %v1061_v32  ;;  %2549 = vmatpush3.msra.mxu0 %v95_v34 }
 0x40c   :  { %v1108_v3 = vmul.f32 %v2673_v36, %v3210_v10  ;;  %2550 = vmatprep.subr.mxu0 %v94_v45 }
 0x40d   :  { %v1064_v38 = vpop.xlane.xlu1 %1063  ;;  %2551 = vmatpush3.msra.mxu0 %v94_v45 }
 0x40e   :  { %2532 = vmatmul.mubr.msk.f32.gmra.mxu0 %vm210_vm2, %v1108_v3  ;;  %2686 = vrcp.f32 %v1064_v38  ;;  %2552 = vmatprep.subr.mxu0 %v93_v29 }
 0x40f   :  { %v2675_v16 = vpop.eup %2674  ;;  %2534 = vmatprep.mubr.msk.f32.mxu0 %vm2827_vm1, %v2824_v7  ;;  %2553 = vmatpush3.msra.mxu0 %v93_v29  ;;  %v100_v29 = vld [vmem:[#allocation8 + $0x38] sm:$0xff] }
 0x410   :  { %v1109_v25 = vmul.f32 %v2675_v16, %v3214_v56  ;;  %2554 = vmatprep.subr.mxu0 %v92_v6 }
 0x411   :  { %v1574_v39 = vpop.permute.xlu1 %1573  ;;  %2555 = vmatpush3.msra.mxu0 %v92_v6  ;;  %v99_v6 = vld [vmem:[#allocation8 + $0x30] sm:$0xff] }
 0x412   :  { %2516 = vmatpush3.msra.mxu1 %v1574_v39  ;;  %2535 = vmatmul.mubr.msk.f32.gmra.mxu0 %vm210_vm2, %v1109_v25 }
 0x413   :  { %v2677_v17 = vpop.eup %2676  ;;  %2537 = vmatprep.subr.mxu1 %v2824_v7 }
 0x414   :  { %v1104_v10 = vmul.f32 %v2677_v17, %v3218_v63  ;;  %v2679_v46 = vpop.eup %2678 }
 0x415   :  { %v1105_v56 = vmul.f32 %v2679_v46, %v3173_v42  ;;  %v2681_v30 = vpop.eup %2680 }
 0x416   :  { %2518 = vmatmul.mubr.msk.f32.vlgmr.msra.gmra.mxu1 %vm210_vm2, %v1104_v10  ;;  %v1106_v15 = vmul.f32 %v2681_v30, %v3184_v58 }
 0x417   :  { %2538 = vmatpush3.msra.mxu1 %v1758_v47  ;;  %2520 = vmatprep.mubr.msk.f32.mxu1 %vm2827_vm1, %v2824_v7  ;;  %v2683_v63 = vpop.eup %2682 }
 0x418   :  { %v1110_v52 = vmul.f32 %v2683_v63, %v3222_v26  ;;  %v2685_v11 = vpop.eup %2684  ;;  %2565 = vmatprep.subr.mxu1 %v100_v29 }
 0x419   :  { %v1111_v42 = vmul.f32 %v2685_v11, %v3199_v24 }
 0x41a   :  { %2521 = vmatmul.mubr.msk.f32.gmra.mxu1 %vm210_vm2, %v1105_v56 }
 0x41b   :  { %2523 = vmatprep.mubr.msk.f32.mxu1 %vm2827_vm1, %v2824_v7  ;;  %v2687_v57 = vpop.eup %2686 }
 0x41c   :  { %v1112_v58 = vmul.f32 %v2687_v57, %v3226_v48 }
 0x41e   :  { %2524 = vmatmul.mubr.msk.f32.gmra.mxu1 %vm210_vm2, %v1106_v15 }
 0x41f   :  { %2539 = vmatprep.mubr.msk.f32.mxu1 %vm2827_vm1, %v2824_v7 }
 0x422   :  { %2540 = vmatmul.mubr.msk.f32.vlgmr.msra.gmra.mxu1 %vm210_vm2, %v1110_v52 }
 0x423   :  { %2542 = vmatprep.mubr.msk.f32.mxu1 %vm2827_vm1, %v2824_v7  ;;  %2566 = vmatpush3.msra.mxu1 %v100_v29 }
 0x424   :  { %2567 = vmatprep.subr.mxu1 %v99_v6 }
 0x425   :  { %2568 = vmatpush3.msra.mxu1 %v99_v6 }
 0x426   :  { %2543 = vmatmul.mubr.msk.f32.gmra.mxu1 %vm210_vm2, %v1111_v42 }
 0x427   :  { %2545 = vmatprep.mubr.msk.f32.mxu1 %vm2827_vm1, %v2824_v7 }
 0x42a   :  { %2546 = vmatmul.mubr.msk.f32.gmra.mxu1 %vm210_vm2, %v1112_v58 }
 0x45d   :  { %v3333_v41 = vpop.f32.mrf.mxu0 }
 0x45f   :  { %v2464_v26 = vpop.f32.mrf.mxu0 }
 0x460   :  { %v2333_v26 = vld [vmem:[%s3427_s5 + $0x1] ss:$0 sm:$0xff] }
 0x461   :  { %v3335_v49 = vpop.f32.mrf.mxu1 }
 0x462   :  { %v3337_v53 = vpop.f32.mrf.mxu0 }
 0x463   :  { %v2475_v13 = vpop.f32.mrf.mxu1 }
 0x464   :  { %v2467_v21 = vpop.f32.mrf.mxu0 }
 0x465   :  { %v3339_v24 = vpop.f32.mrf.mxu1 }
 0x466   :  { %v3341_v44 = vpop.f32.mrf.mxu0 }
 0x467   :  { %v2478_v37 = vpop.f32.mrf.mxu1 }
 0x468   :  { %v2470_v51 = vpop.f32.mrf.mxu0 }
 0x469   :  { %v3343_v7 = vpop.f32.mrf.mxu1 }
 0x46b   :  { %v2481_v48 = vpop.f32.mrf.mxu1 }
 0x4a5   :  { %v1375_v59 = vpop.f32.mrf.mxu0 }
 0x4a6   :  { %1855 = vrot.lane.b32.xlu0 %v1375_v59, %s2821_s27 }
 0x4a7   :  { %v2486_v27 = vpop.f32.mrf.mxu0 }
 0x4a9   :  { %v1380_v43 = vpop.f32.mrf.mxu0 }
 0x4aa   :  { %1857 = vrot.lane.b32.xlu0 %v1380_v43, %s2821_s27 }
 0x4ab   :  { %v2489_v61 = vpop.f32.mrf.mxu0 }
 0x4ad   :  { %v1385_v54 = vpop.f32.mrf.mxu0 }
 0x4ae   :  { %1859 = vrot.lane.b32.xlu0 %v1385_v54, %s2821_s27 }
 0x4af   :  { %v2492_v60 = vpop.f32.mrf.mxu0 }
 0x4b1   :  { %v1559_v2 = vpop.f32.mrf.mxu0 }
 0x4b3   :  { %v2508_v0 = vpop.f32.mrf.mxu0 }
 0x4b5   :  { %v1564_v1 = vpop.f32.mrf.mxu0 }
 0x4b7   :  { %v2511_v4 = vpop.f32.mrf.mxu0 }
 0x4ba   :  { %v1569_v14 = vpop.f32.mrf.mxu0 }
 0x4bc   :  { %v2514_v55 = vpop.f32.mrf.mxu0 }
 0x4be   :  { %v1467_v20 = vpop.f32.mrf.mxu1 }
 0x4bf   :  { %1861 = vrot.lane.b32.xlu1 %v1467_v20, %s2821_s27 }
 0x4c0   :  { %v2497_v5 = vpop.f32.mrf.mxu1 }
 0x4c2   :  { %v1472_v32 = vpop.f32.mrf.mxu1 }
 0x4c3   :  { %1863 = vrot.lane.b32.xlu0 %v1472_v32, %s2821_s27 }
 0x4c4   :  { %v2500_v50 = vpop.f32.mrf.mxu1 }
 0x4c6   :  { %v1477_v8 = vpop.f32.mrf.mxu1 }
 0x4c7   :  { %1865 = vrot.lane.b32.xlu1 %v1477_v8, %s2821_s27  ;;  %1879 = vrot.lane.b32.xlu0 %v1559_v2, %s2831_s21 }
 0x4c8   :  { %v2503_v9 = vpop.f32.mrf.mxu1 }
 0x4ca   :  { %v1743_v22 = vpop.f32.mrf.mxu0 }
 0x4cb   :  { %1881 = vrot.lane.b32.xlu1 %v1564_v1, %s2831_s21  ;;  %1883 = vrot.lane.b32.xlu0 %v1569_v14, %s2831_s21 }
 0x4cc   :  { %v2530_v12 = vpop.f32.mrf.mxu0 }
 0x4ce   :  { %v1748_v35 = vpop.f32.mrf.mxu0 }
 0x4d0   :  { %v2533_v19 = vpop.f32.mrf.mxu0 }
 0x4d2   :  { %v1753_v18 = vpop.f32.mrf.mxu0 }
 0x4d4   :  { %v2536_v23 = vpop.f32.mrf.mxu0 }
 0x4d5   :  { %v98_v23 = vld [vmem:[#allocation8 + $0x28] sm:$0xff] }
 0x4d6   :  { %v1651_v33 = vpop.f32.mrf.mxu1  ;;  %2569 = vmatprep.subr.mxu1 %v98_v23 }
 0x4d7   :  { %1885 = vrot.lane.b32.xlu1 %v1651_v33, %s2831_s21  ;;  %v97_v33 = vld [vmem:[#allocation8 + $0x20] sm:$0xff]  ;;  %2570 = vmatpush3.msra.mxu1 %v98_v23 }
 0x4d8   :  { %v2519_v40 = vpop.f32.mrf.mxu1  ;;  %2571 = vmatprep.subr.mxu1 %v97_v33 }
 0x4d9   :  { %2572 = vmatpush3.msra.mxu1 %v97_v33 }
 0x4da   :  { %v1656_v28 = vpop.f32.mrf.mxu1 }
 0x4db   :  { %1887 = vrot.lane.b32.xlu0 %v1656_v28, %s2831_s21 }
 0x4dc   :  { %v2522_v62 = vpop.f32.mrf.mxu1 }
 0x4de   :  { %v1661_v31 = vpop.f32.mrf.mxu1 }
 0x4df   :  { %1889 = vrot.lane.b32.xlu1 %v1661_v31, %s2831_s21  ;;  %1903 = vrot.lane.b32.xlu0 %v1743_v22, %s2832_s22 }
 0x4e0   :  { %v2525_v36 = vpop.f32.mrf.mxu1 }
 0x4e2   :  { %v1835_v3 = vpop.f32.mrf.mxu1 }
 0x4e3   :  { %1905 = vrot.lane.b32.xlu1 %v1748_v35, %s2832_s22  ;;  %1907 = vrot.lane.b32.xlu0 %v1753_v18, %s2832_s22 }
 0x4e4   :  { %v2541_v38 = vpop.f32.mrf.mxu1 }
 0x4e6   :  { %v1840_v16 = vpop.f32.mrf.mxu1 }
 0x4e7   :  { %1909 = vrot.lane.b32.xlu1 %v1835_v3, %s2832_s22  ;;  %1911 = vrot.lane.b32.xlu0 %v1840_v16, %s2832_s22 }
 0x4e8   :  { %v2544_v25 = vpop.f32.mrf.mxu1 }
 0x4ea   :  { %v1845_v39 = vpop.f32.mrf.mxu1 }
 0x4eb   :  { %1913 = vrot.lane.b32.xlu1 %v1845_v39, %s2832_s22 }
 0x4ec   :  { %v2547_v17 = vpop.f32.mrf.mxu1 }
 0x518   :  { %v1856_v10 = vpop.permute.xlu0 %1855 }
 0x519   :  { %v1921_v58 = vsel %vm210_vm2, %v3333_v41, %v1856_v10 }
 0x51c   :  { %v1858_v46 = vpop.permute.xlu0 %1857 }
 0x51d   :  { %v1922_v59 = vsel %vm210_vm2, %v3337_v53, %v1858_v46 }
 0x520   :  { %v1860_v47 = vpop.permute.xlu0 %1859 }
 0x521   :  { %v1923_v27 = vsel %vm210_vm2, %v3341_v44, %v1860_v47 }
 0x531   :  { %v1862_v30 = vpop.permute.xlu1 %1861 }
 0x532   :  { %v1924_v53 = vsel %vm210_vm2, %v3335_v49, %v1862_v30 }
 0x535   :  { %v1864_v56 = vpop.permute.xlu0 %1863 }
 0x536   :  { %v1925_v44 = vsel %vm210_vm2, %v3339_v24, %v1864_v56 }
 0x539   :  { %v1866_v15 = vpop.permute.xlu1 %1865  ;;  %v1880_v63 = vpop.permute.xlu0 %1879 }
 0x53a   :  { %v1928_v13 = vsel %vm1927_vm3, %v1921_v58, %v1880_v63  ;;  %v1926_v24 = vsel %vm210_vm2, %v3343_v7, %v1866_v15 }
 0x53d   :  { %v1882_v52 = vpop.permute.xlu1 %1881  ;;  %v1884_v11 = vpop.permute.xlu0 %1883 }
 0x53e   :  { %v1929_v41 = vsel %vm1927_vm3, %v1922_v59, %v1882_v52  ;;  %v1930_v43 = vsel %vm1927_vm3, %v1923_v27, %v1884_v11 }
 0x549   :  { %v1886_v42 = vpop.permute.xlu1 %1885 }
 0x54a   :  { %v1931_v4 = vsel %vm1927_vm3, %v1924_v53, %v1886_v42 }
 0x54d   :  { %v1888_v57 = vpop.permute.xlu0 %1887 }
 0x54e   :  { %v1932_v14 = vsel %vm1927_vm3, %v1925_v44, %v1888_v57 }
 0x551   :  { %v1890_v21 = vpop.permute.xlu1 %1889  ;;  %v1904_v37 = vpop.permute.xlu0 %1903 }
 0x552   :  { %v1935_v51 = vsel %vm1934_vm4, %v1928_v13, %v1904_v37  ;;  %v1933_v9 = vsel %vm1927_vm3, %v1926_v24, %v1890_v21 }
 0x553   :  { %2556 = vmatprep.mubr.msk.f32.mxu0 %vm112_vm0, %v1935_v51  ;;  %v2062_v48 = vmul.f32 %v2333_v26, %v1935_v51 }
 0x555   :  { %v1906_v61 = vpop.permute.xlu1 %1905  ;;  %v1908_v54 = vpop.permute.xlu0 %1907  ;;  %v2068_v60 = vsel %vm112_vm0, %v2062_v48, 0.0 }
 0x556   :  { %v1936_v2 = vsel %vm1934_vm4, %v1929_v41, %v1906_v61  ;;  %v1937_v0 = vsel %vm1934_vm4, %v1930_v43, %v1908_v54  ;;  %2069 = vadd.xlane.f32.xlu0 %v2068_v60  ;;  %v2326_v43 = vld [vmem:[%s3427_s5] ss:$0 sm:$0xff] }
 0x557   :  { %2557 = vmatmul.mubr.msk.f32.vlgmr.msra.gmra.mxu0 %vm112_vm0, %v1936_v2  ;;  %v2064_v1 = vmul.f32 %v2333_v26, %v1937_v0  ;;  %v2063_v32 = vmul.f32 %v2333_v26, %v1936_v2 }
 0x558   :  { %2559 = vmatprep.mubr.msk.f32.mxu0 %vm112_vm0, %v1937_v0 }
 0x559   :  { %v1910_v55 = vpop.permute.xlu1 %1909  ;;  %v1912_v20 = vpop.permute.xlu0 %1911  ;;  %v2074_v5 = vsel %vm112_vm0, %v2064_v1, 0.0  ;;  %v2071_v35 = vsel %vm112_vm0, %v2063_v32, 0.0 }
 0x55a   :  { %v1938_v50 = vsel %vm1934_vm4, %v1931_v4, %v1910_v55  ;;  %v1939_v8 = vsel %vm1934_vm4, %v1932_v14, %v1912_v20  ;;  %2075 = vadd.xlane.f32.xlu1 %v2074_v5 }
 0x55b   :  { %2560 = vmatmul.mubr.msk.f32.gmra.mxu0 %vm112_vm0, %v1938_v50  ;;  %v2065_v49 = vmul.f32 %v2333_v26, %v1938_v50  ;;  %v2066_v18 = vmul.f32 %v2333_v26, %v1939_v8 }
 0x55c   :  { %2562 = vmatprep.mubr.msk.f32.mxu0 %vm112_vm0, %v1939_v8 }
 0x55d   :  { %v1914_v22 = vpop.permute.xlu1 %1913  ;;  %v2077_v12 = vsel %vm112_vm0, %v2065_v49, 0.0  ;;  %v2080_v7 = vsel %vm112_vm0, %v2066_v18, 0.0 }
 0x55e   :  { %v1940_v34 = vsel %vm1934_vm4, %v1933_v9, %v1914_v22  ;;  %2078 = vadd.xlane.f32.xlu0 %v2077_v12  ;;  %2072 = vadd.xlane.f32.xlu1 %v2071_v35 }
 0x55f   :  { %2563 = vmatmul.mubr.msk.f32.gmra.mxu0 %vm112_vm0, %v1940_v34  ;;  %v2067_v19 = vmul.f32 %v2333_v26, %v1940_v34 }
 0x561   :  { %v2083_v45 = vsel %vm112_vm0, %v2067_v19, 0.0 }
 0x562   :  { %2084 = vadd.xlane.f32.xlu0 %v2083_v45 }
 0x566   :  { %2081 = vadd.xlane.f32.xlu0 %v2080_v7 }
 0x5df   :  { %v2070_v40 = vpop.xlane.xlu0 %2069 }
 0x5e3   :  { %v2076_v28 = vpop.xlane.xlu1 %2075 }
 0x5e4   :  { %v2086_v62 = vmax.f32 %v2070_v40, %v2076_v28 }
 0x5e7   :  { %v2073_v31 = vpop.xlane.xlu1 %2072  ;;  %v2079_v36 = vpop.xlane.xlu0 %2078 }
 0x5e8   :  { %v2087_v3 = vmax.f32 %v2086_v62, %v2073_v31 }
 0x5ea   :  { %v2090_v38 = vsub.f32 %v2070_v40, %v2087_v3  ;;  %v2091_v16 = vsub.f32 %v2073_v31, %v2087_v3  ;;  %v2092_v17 = vsub.f32 %v2076_v28, %v2087_v3  ;;  %v2334_v3 = vld [vmem:[%s3427_s5 + $0x2] ss:$0 sm:$0xff] }
 0x5eb   :  { %v2085_v25 = vpop.xlane.xlu0 %2084 }
 0x5ec   :  { %v2096_v39 = vmul.f32 1.442695, %v2090_v38  ;;  %v2098_v10 = vmul.f32 1.442695, %v2091_v16  ;;  %v2088_v46 = vmax.f32 %v2079_v36, %v2085_v25  ;;  %v2100_v30 = vmul.f32 1.442695, %v2092_v17 }
 0x5ed   :  { %v2708_v17 = vld [vmem:[#allocation2 + $0x8] sm:$0xff] }
 0x5ee   :  { %2688 = vpow2.f32 %v2096_v39 }
 0x5ef   :  { %v2082_v47 = vpop.xlane.xlu0 %2081  ;;  %2690 = vpow2.f32 %v2098_v10 }
 0x5f0   :  { %v2089_v56 = vmax.f32 %v2088_v46, %v2082_v47  ;;  %2692 = vpow2.f32 %v2100_v30 }
 0x5f2   :  { %v2093_v15 = vsub.f32 %v2079_v36, %v2089_v56  ;;  %v2094_v63 = vsub.f32 %v2082_v47, %v2089_v56  ;;  %v2095_v42 = vsub.f32 %v2085_v25, %v2089_v56  ;;  %v2709_v47 = vld [vmem:[#allocation2] sm:$0xff] }
 0x5f4   :  { %v2102_v52 = vmul.f32 1.442695, %v2093_v15  ;;  %v2104_v11 = vmul.f32 1.442695, %v2094_v63  ;;  %v2106_v57 = vmul.f32 1.442695, %v2095_v42 }
 0x5f6   :  { %2694 = vpow2.f32 %v2102_v52 }
 0x5f7   :  { %2696 = vpow2.f32 %v2104_v11 }
 0x5f8   :  { %2698 = vpow2.f32 %v2106_v57 }
 0x5fb   :  { %v2689_v58 = vpop.eup %2688 }
 0x5fc   :  { %v2691_v26 = vpop.eup %2690 }
 0x5fd   :  { %v2108_v13 = vadd.f32 %v2691_v26, %v2689_v58  ;;  %v2693_v21 = vpop.eup %2692 }
 0x5ff   :  { %v2109_v48 = vadd.f32 %v2693_v21, %v2108_v13 }
 0x601   :  { %2700 = vrcp.f32 %v2109_v48 }
 0x603   :  { %v2695_v37 = vpop.eup %2694 }
 0x604   :  { %v2697_v51 = vpop.eup %2696 }
 0x605   :  { %v2110_v59 = vadd.f32 %v2697_v51, %v2695_v37  ;;  %v2699_v27 = vpop.eup %2698 }
 0x607   :  { %v2111_v41 = vadd.f32 %v2699_v27, %v2110_v59 }
 0x609   :  { %2702 = vrcp.f32 %v2111_v41 }
 0x60e   :  { %v2701_v61 = vpop.eup %2700 }
 0x60f   :  { %v2114_v0 = vmul.f32 %v2701_v61, %v2691_v26  ;;  %v2113_v53 = vmul.f32 %v2701_v61, %v2689_v58  ;;  %v2115_v8 = vmul.f32 %v2701_v61, %v2693_v21  ;;  %v2337_v61 = vld [vmem:[%s3427_s5 + $0x3] ss:$0 sm:$0xff] }
 0x616   :  { %v2703_v55 = vpop.eup %2702 }
 0x617   :  { %v2558_v54 = vpop.f32.mrf.mxu0  ;;  %v2117_v9 = vmul.f32 %v2703_v55, %v2695_v37  ;;  %v2119_v34 = vmul.f32 %v2703_v55, %v2699_v27  ;;  %v2118_v29 = vmul.f32 %v2703_v55, %v2697_v51 }
 0x618   :  { %v2035_v60 = vadd.f32 %v2558_v54, %v2326_v43 }
 0x619   :  { %v2029_v2 = vpop.f32.mrf.mxu0 }
 0x61a   :  { %v2030_v1 = vadd.f32 %v2326_v43, %v2029_v2  ;;  %v2121_v4 = vmul.f32 %v2114_v0, %v2035_v60  ;;  %v2338_v2 = vld [vmem:[%s3427_s5 + $0x4] ss:$0 sm:$0xff] }
 0x61b   :  { %v2561_v44 = vpop.f32.mrf.mxu0 }
 0x61c   :  { %v2120_v14 = vmul.f32 %v2113_v53, %v2030_v1  ;;  %v2045_v32 = vadd.f32 %v2561_v44, %v2326_v43  ;;  %v2127_v24 = vsel %vm112_vm0, %v2121_v4, 0.0 }
 0x61d   :  { %v2039_v20 = vpop.f32.mrf.mxu0 }
 0x61e   :  { %v2126_v5 = vsel %vm112_vm0, %v2120_v14, 0.0  ;;  %v2040_v50 = vadd.f32 %v2326_v43, %v2039_v20  ;;  %v2123_v45 = vmul.f32 %v2117_v9, %v2045_v32 }
 0x61f   :  { %v2564_v49 = vpop.f32.mrf.mxu0  ;;  %v2128_v35 = vadd.f32 %v2127_v24, %v2126_v5 }
 0x620   :  { %v2122_v22 = vmul.f32 %v2115_v8, %v2040_v50  ;;  %v2055_v12 = vadd.f32 %v2564_v49, %v2326_v43  ;;  %v2131_v40 = vsel %vm112_vm0, %v2123_v45, 0.0 }
 0x621   :  { %v2049_v19 = vpop.f32.mrf.mxu0 }
 0x622   :  { %v2129_v18 = vsel %vm112_vm0, %v2122_v22, 0.0  ;;  %v2050_v7 = vadd.f32 %v2326_v43, %v2049_v19  ;;  %v2125_v23 = vmul.f32 %v2119_v34, %v2055_v12 }
 0x623   :  { %v2130_v6 = vadd.f32 %v2129_v18, %v2128_v35 }
 0x624   :  { %v2124_v33 = vmul.f32 %v2118_v29, %v2050_v7  ;;  %v2134_v31 = vsel %vm112_vm0, %v2125_v23, 0.0 }
 0x625   :  { %2573 = vmatprep.mubr.msk.f32.mxu1 %vm112_vm0, %v2130_v6 }
 0x626   :  { %v2132_v28 = vsel %vm112_vm0, %v2124_v33, 0.0 }
 0x627   :  { %v2133_v62 = vadd.f32 %v2132_v28, %v2131_v40 }
 0x629   :  { %v2135_v36 = vadd.f32 %v2134_v31, %v2133_v62 }
 0x62b   :  { %2574 = vmatmul.mubr.msk.f32.vlgmr.msra.gmra.mxu1 %vm112_vm0, %v2135_v36 }
 0x6eb   :  { %v2575_v38 = vpop.f32.mrf.mxu1 }
 0x6ec   :  { %v2218_v16 = vadd.f32 %v2575_v38, %v2334_v3 }
 0x6ed   :  { %v2212_v25 = vpop.f32.mrf.mxu1 }
 0x6ee   :  { %v2213_v39 = vadd.f32 %v2334_v3, %v2212_v25  ;;  %v2222_v10 = vadd.f32 %v2708_v17, %v2218_v16 }
 0x6f0   :  { %v2226_v46 = vsel %vm112_vm0, %v2222_v10, 0.0  ;;  %v2221_v56 = vadd.f32 %v2709_v47, %v2213_v39 }
 0x6f1   :  { %2227 = vadd.xlane.f32.xlu0 %v2226_v46 }
 0x6f2   :  { %v2223_v30 = vsel %vm112_vm0, %v2221_v56, 0.0 }
 0x6f3   :  { %2224 = vadd.xlane.f32.xlu1 %v2223_v30 }
 0x77a   :  { %v2228_v15 = vpop.xlane.xlu0 %2227 }
 0x77b   :  { %v2231_v63 = vmul.f32 0.03125, %v2228_v15 }
 0x77c   :  { %v2225_v52 = vpop.xlane.xlu1 %2224 }
 0x77d   :  { %v2233_v11 = vsub.f32 %v2222_v10, %v2231_v63  ;;  %v2230_v42 = vmul.f32 0.03125, %v2225_v52 }
 0x77f   :  { %v2232_v57 = vsub.f32 %v2221_v56, %v2230_v42  ;;  %v2235_v58 = vmul.f32 %v2233_v11, %v2233_v11 }
 0x781   :  { %v2239_v26 = vsel %vm112_vm0, %v2235_v58, 0.0  ;;  %v2234_v13 = vmul.f32 %v2232_v57, %v2232_v57 }
 0x782   :  { %2240 = vadd.xlane.f32.xlu0 %v2239_v26 }
 0x783   :  { %v2236_v21 = vsel %vm112_vm0, %v2234_v13, 0.0 }
 0x784   :  { %2237 = vadd.xlane.f32.xlu1 %v2236_v21 }
 0x80b   :  { %v2241_v37 = vpop.xlane.xlu0 %2240 }
 0x80c   :  { %v2243_v51 = vmul.f32 0.03125, %v2241_v37 }
 0x80d   :  { %v2238_v48 = vpop.xlane.xlu1 %2237 }
 0x80e   :  { %v2245_v59 = vadd.f32 1e-12, %v2243_v51  ;;  %v2242_v27 = vmul.f32 0.03125, %v2238_v48 }
 0x810   :  { %2704 = vrsqrt.f32 %v2245_v59  ;;  %v2244_v41 = vadd.f32 1e-12, %v2242_v27 }
 0x812   :  { %2706 = vrsqrt.f32 %v2244_v41 }
 0x81d   :  { %v2705_v43 = vpop.eup %2704 }
 0x81e   :  { %v2249_v54 = vmul.f32 %v2705_v43, %v2233_v11 }
 0x81f   :  { %v2707_v60 = vpop.eup %2706 }
 0x820   :  { %v2248_v0 = vmul.f32 %v2707_v60, %v2232_v57  ;;  %v2255_v1 = vmul.f32 %v2337_v61, %v2249_v54 }
 0x822   :  { %v2254_v53 = vmul.f32 %v2337_v61, %v2248_v0  ;;  %v2261_v44 = vadd.f32 %v2338_v2, %v2255_v1 }
 0x824   :  { %v2260_v4 = vadd.f32 %v2338_v2, %v2254_v53  ;;  %2263 = vst.msk [vmem:[#allocation10 + $0x8] sm:$0xff] %vm112_vm0, %v2261_v44 }
 0x826   :  { %2262 = vst.msk [vmem:[#allocation10] sm:$0xff] %vm112_vm0, %v2260_v4 }
 0x827   :  { %2801 = shalt.err (!%p2798_p10)
}
 0x828   :  { %2275 = dma.vmem_to_hbm [thread:$0]  %s2270_s12, 256, %s3428_s6, [#allocation4], %s2820_s26, %s2820_s26, %s2821_s27  }
 0x829   :  { %2816 = dma.done.wait [#allocation4], 256  }
 0x82a   :  { %2817 = vsyncadd [#allocation4], 4294967040 }
 0x82b   :  { %2279 = vsyncpa [#allocation3], 1 }
 0x82c   :  { %2280 = vsyncpa [#allocation6], 1 }
 0x82d   :  { %2281 = vsyncpa [#allocation9], 1 }
 0x82e   :  { %2282 = vsyncpa [#allocation4], 1 }

</bundles_post_ra>
